<compile_context>
chip_gen: v5e
topology: v5e:2x2
jax: 0.10.0
libtpu: 0.0.40
codegen_flags: <defaults>
</compile_context>

<pallas_src>
import functools

import jax
import jax.numpy as jnp
from jax import lax
from jax.experimental import pallas as pl
from jax.experimental.pallas import tpu as pltpu

_TILE_TARGET_BYTES = 8 << 20      # per-step double-buffered activation budget


# ----------------------------------------------------------------------------
# Tiling / compiler-param helpers
# ----------------------------------------------------------------------------
@functools.lru_cache(maxsize=None)
def _vmem_cap_bytes():
    """Generation-aware scoped-VMEM cap: ~56 MiB on 128-MiB parts (v5e/v6e),
    ~26 MiB on 64-MiB parts (v7x) so one tiling choice fits every chip."""
    phys = 64 << 20
    try:
        info = pltpu.get_tpu_info()
        phys = int(getattr(info, "vmem_capacity_bytes", phys))
    except Exception:
        pass
    return (56 << 20) if phys >= (100 << 20) else (26 << 20)


def _vmem_limit(step_bytes):
    need = 2 * int(step_bytes) + (8 << 20)        # double-buffer + headroom
    return int(min(max(need, 16 << 20), _vmem_cap_bytes()))


def _cparams(vmem_bytes, ndims=1):
    # Grid axes here are fully independent -> "parallel" lets v7x shard them
    # over both TensorCores; harmless no-op on single-TC v5e/v6e.
    return pltpu.CompilerParams(dimension_semantics=("parallel",) * ndims,
                                vmem_limit_bytes=vmem_bytes)


def _pick_col_tile(m, bytes_per_col):
    """Largest lane tile (multiple of 128) dividing m whose double-buffered
    footprint stays near _TILE_TARGET_BYTES; full-array block when m is small
    or not 128-aligned (single grid step, no padding, no masked stores)."""
    target = max(128, _TILE_TARGET_BYTES // max(1, 2 * int(bytes_per_col)))
    if m <= target or m % 128 != 0:
        return m
    best, t = 128, 128
    while t <= target and t <= m:
        if m % t == 0:
            best = t
        t += 128
    return best


def _pick_head_htile(h):
    if h <= 256:
        return h
    t = 256
    while t >= 8:
        if h % t == 0:
            return t
        t -= 8
    return h


# ----------------------------------------------------------------------------
# Pallas kernels (channels-first: lane axis = flattened spatial M)
# ----------------------------------------------------------------------------
def _linear_cf_kernel(wt_ref, x_ref, b_ref, o_ref, *, relu):
    # Y(N, tm) = W(N, K) @ X(K, tm) + b(N, 1); MXU with f32 accumulation.
    acc = jnp.dot(wt_ref[...], x_ref[...], preferred_element_type=jnp.float32)
    acc = acc + b_ref[...]
    if relu:
        acc = jnp.maximum(acc, 0.0)
    o_ref[...] = acc.astype(o_ref.dtype)


def _neck_cf_kernel(a_ref, b_ref, wt_ref, bias_ref, wo_ref, o_ref):
    # Fused neck stage: s(1, tm) = w_out(1,8) @ relu(W(8,C) @ |A-B|(C,tm) + b).
    # The 1x1 neck_out projection is folded in (commutes with the bilinear
    # upsample). |A-B| stays bf16 (MXU input); output is lane-dense f32.
    d = jnp.abs(a_ref[...] - b_ref[...])
    h = jnp.dot(wt_ref[...], d, preferred_element_type=jnp.float32)
    h = jnp.maximum(h + bias_ref[...], 0.0)
    o_ref[...] = jnp.dot(wo_ref[...], h, preferred_element_type=jnp.float32)


def _head_kernel(scal_ref, change_ref, ryu_ref, rxu_ref, o_ref):
    # Fused FCNHead(1, 2) + final align_corners upsample for one (batch,
    # H-tile) grid cell:
    #   3x3 conv (1->1) via pltpu.roll shifts + hoisted zero-border masks,
    #   BN (identity at eval-mode default init) + ReLU,
    #   bilinear align_corners upsample as two bf16 matmuls (f32 accumulate),
    #   1x1 conv (1->2) as per-class scale+shift (commutes with the upsample
    #   since the interpolation rows sum to 1),
    # written directly as NCHW logits (lane dim = W, lane-dense).
    # scal_ref (SMEM, f32[14]): w3[0:9], b3, w1_cls0, w1_cls1, b1_cls0, b1_cls1
    c = change_ref[0]                                  # (H4, W4) f32
    h4, w4 = c.shape
    rows = lax.broadcasted_iota(jnp.int32, (h4, w4), 0)
    cols = lax.broadcasted_iota(jnp.int32, (h4, w4), 1)
    row_ok = {-1: rows >= 1, 1: rows < h4 - 1}         # hoisted border masks
    col_ok = {-1: cols >= 1, 1: cols < w4 - 1}
    hid = jnp.zeros((h4, w4), jnp.float32)
    for dy in (-1, 0, 1):
        for dx in (-1, 0, 1):
            tap = scal_ref[(dy + 1) * 3 + (dx + 1)]
            s = c
            if dy != 0:
                s = pltpu.roll(s, shift=(-dy) % h4, axis=0)   # s[y,x]=c[y+dy,x]
            if dx != 0:
                s = pltpu.roll(s, shift=(-dx) % w4, axis=1)   # s[y,x]=c[y,x+dx]
            m = None
            if dy != 0:
                m = row_ok[dy]
            if dx != 0:
                m = col_ok[dx] if m is None else jnp.logical_and(m, col_ok[dx])
            if m is not None:
                s = jnp.where(m, s, 0.0)
            hid = hid + tap * s
    hid = jnp.maximum(hid + scal_ref[9], 0.0).astype(jnp.bfloat16)
    up = jnp.dot(ryu_ref[...], hid, preferred_element_type=jnp.float32)  # (th,W4)
    up = jnp.dot(up.astype(jnp.bfloat16), rxu_ref[...],
                 preferred_element_type=jnp.float32)                     # (th,W)
    o_ref[0, 0] = up * scal_ref[10] + scal_ref[12]
    o_ref[0, 1] = up * scal_ref[11] + scal_ref[13]


# ----------------------------------------------------------------------------
# Pallas wrappers
# ----------------------------------------------------------------------------
def pallas_linear_cf(x, w, b, relu=False, out_dtype=jnp.bfloat16):
    """y = relu?(w @ x + b).  x: (K, M) bf16, w: (N, K), b: (N,) f32 -> (N, M)."""
    k, m = x.shape
    n = w.shape[0]
    bpc = k * x.dtype.itemsize + n * jnp.dtype(out_dtype).itemsize
    tm = _pick_col_tile(m, bpc)
    vmem = _vmem_limit(tm * bpc + n * k * w.dtype.itemsize + n * 4)
    return pl.pallas_call(
        functools.partial(_linear_cf_kernel, relu=relu),
        out_shape=jax.ShapeDtypeStruct((n, m), out_dtype),
        grid=(m // tm,),
        in_specs=[
            pl.BlockSpec((n, k), lambda i: (0, 0)),
            pl.BlockSpec((k, tm), lambda i: (0, i)),
            pl.BlockSpec((n, 1), lambda i: (0, 0)),
        ],
        out_specs=pl.BlockSpec((n, tm), lambda i: (0, i)),
        compiler_params=_cparams(vmem),
    )(w, x, b.reshape(n, 1).astype(jnp.float32))


def pallas_neck_stage_cf(flat, half, w, bias, w_out):
    """w_out @ relu(w @ |A - B| + bias).  flat: (C, 2*half) bf16 with image-A
    columns first; w: (8, C) bf16; w_out: (1, 8).  Returns (1, half) f32."""
    c, _ = flat.shape
    n = w.shape[0]
    bpc = 2 * c * flat.dtype.itemsize + 4
    if half % 128 == 0:
        # Two BlockSpec views of the SAME operand: no wrapper-side half-slices.
        ts = _pick_col_tile(half, bpc)
        hb = half // ts
        a_arg, b_arg = flat, flat
        a_map = lambda i: (0, i)
        b_map = lambda i: (0, i + hb)
    else:
        # TODO(synk): tiny-map fallback only (toy resolutions); the two small
        # wrapper slices here are negligible HBM traffic.
        ts, hb = half, 1
        a_arg, b_arg = flat[:, :half], flat[:, half:]
        a_map = lambda i: (0, 0)
        b_map = lambda i: (0, 0)
    vmem = _vmem_limit(2 * ts * c * flat.dtype.itemsize + ts * 4
                       + n * c * 2 + n * 8)
    return pl.pallas_call(
        _neck_cf_kernel,
        out_shape=jax.ShapeDtypeStruct((1, half), jnp.float32),
        grid=(hb,),
        in_specs=[
            pl.BlockSpec((c, ts), a_map),
            pl.BlockSpec((c, ts), b_map),
            pl.BlockSpec((n, c), lambda i: (0, 0)),
            pl.BlockSpec((n, 1), lambda i: (0, 0)),
            pl.BlockSpec((1, n), lambda i: (0, 0)),
        ],
        out_specs=pl.BlockSpec((1, ts), lambda i: (0, i)),
        compiler_params=_cparams(vmem),
    )(a_arg, b_arg, w, bias.reshape(n, 1).astype(jnp.float32),
      w_out.astype(jnp.float32))


# ----------------------------------------------------------------------------
# Plain-JAX glue (layout plumbing, precomputed align_corners matrices)
# ----------------------------------------------------------------------------
def space_to_depth_cf(x, r):
    # (C, N, H, W) -> (r*r*C, N, H/r, W/r), merged-channel order (dy, dx, c).
    # TODO(synk): still an XLA transpose copy per stage; could be folded into
    # the previous stage's out_spec to halve backbone HBM traffic.
    c, n, h, w = x.shape
    x = x.reshape(c, n, h // r, r, w // r, r)
    x = jnp.transpose(x, (3, 5, 0, 1, 2, 4))
    return x.reshape(r * r * c, n, h // r, w // r)


def _ac_resize_matrix(out_len, in_len):
    """Row-stochastic align_corners=True bilinear interpolation matrix."""
    if out_len == in_len:
        return jnp.eye(out_len, dtype=jnp.float32)
    if out_len == 1:
        return jnp.zeros((1, in_len), jnp.float32).at[0, 0].set(1.0)
    src = jnp.arange(out_len, dtype=jnp.float32) * ((in_len - 1) / (out_len - 1))
    i0 = jnp.clip(jnp.floor(src).astype(jnp.int32), 0, in_len - 1)
    i1 = jnp.minimum(i0 + 1, in_len - 1)
    frac = src - i0.astype(jnp.float32)
    j = jnp.arange(in_len)[None, :]
    return ((1.0 - frac)[:, None] * (j == i0[:, None])
            + frac[:, None] * (j == i1[:, None])).astype(jnp.float32)


# ----------------------------------------------------------------------------
# Model pieces
# ----------------------------------------------------------------------------
def backbone_forward(p, x_cf):
    # TODO(synk): real dshaformer_base backbone (attention blocks, loaded from
    # checkpoints) not provided; approximated by four patch-embed stages
    # (space-to-depth + channels-first Pallas matmul + ReLU) -> C,2C,4C,8C at
    # strides 4..32.  ChannelChecker is a shape sanity check -> identity here.
    feats = []
    h = x_cf                                           # (3, 2B, H, W) bf16
    for i, r in enumerate((4, 2, 2, 2)):
        h = space_to_depth_cf(h, r)
        k, n2, hh, ww = h.shape
        y = pallas_linear_cf(h.reshape(k, -1),
                             p[f"stage{i}_w"].astype(jnp.bfloat16),
                             p[f"stage{i}_b"], relu=True)
        h = y.reshape(-1, n2, hh, ww)
        feats.append(h)
    return feats


def neck_forward(p, feats, batch):
    # TODO(synk): exact HCFNeck not provided; implemented as fused per-stage
    # |fa-fb| projection with the final 1x1 neck_out folded in (Pallas), then
    # align_corners upsample-to-stride-4 + sum as precomputed interpolation
    # matmuls (1-channel maps only).
    # TODO(synk): the 3 tiny einsum dispatches below could also be folded into
    # the head kernel; modest win, skipped to keep the head simple.
    h4, w4 = feats[0].shape[2:4]
    maps = []
    for i, f in enumerate(feats):
        c, _, h, w = f.shape
        half = batch * h * w                           # image-A columns first
        s = pallas_neck_stage_cf(f.reshape(c, -1), half,
                                 p[f"neck_proj{i}_w"].astype(jnp.bfloat16),
                                 p[f"neck_proj{i}_b"],
                                 p["neck_out_w"])
        maps.append(s.reshape(batch, h, w))
    change = maps[0]
    for i in range(1, len(maps)):
        h, w = maps[i].shape[1:]
        ry = _ac_resize_matrix(h4, h)
        rx = _ac_resize_matrix(w4, w)
        change = change + jnp.einsum("yj,bjk,xk->byx", ry, maps[i], rx)
    return change + p["neck_out_b"][0]                 # (B, H/4, W/4) f32


def head_forward(p, change, out_size):
    # FCNHead(1, 2) + final align_corners upsample, fused in one kernel,
    # gridded over (batch, output-H tiles).
    batch, h4, w4 = change.shape
    h, w = out_size
    th = _pick_head_htile(h)
    ryu = _ac_resize_matrix(h, h4).astype(jnp.bfloat16)      # (H, H4)
    rxu = _ac_resize_matrix(w, w4).T.astype(jnp.bfloat16)    # (W4, W)
    scal = jnp.concatenate([
        p["head_c3_w"].reshape(-1), p["head_c3_b"].reshape(-1),
        p["head_c1_w"].reshape(-1), p["head_c1_b"].reshape(-1),
    ]).astype(jnp.float32)                             # 9 + 1 + 2 + 2 = 14
    vmem = _vmem_limit(h4 * w4 * 4 + th * h4 * 2 + w4 * w * 2
                       + 3 * th * w * 4)
    return pl.pallas_call(
        _head_kernel,
        out_shape=jax.ShapeDtypeStruct((batch, 2, h, w), jnp.float32),
        grid=(batch, h // th),
        in_specs=[
            pl.BlockSpec(memory_space=pltpu.MemorySpace.SMEM),
            pl.BlockSpec((1, h4, w4), lambda b, t: (b, 0, 0)),
            pl.BlockSpec((th, h4), lambda b, t: (t, 0)),
            pl.BlockSpec((w4, w), lambda b, t: (0, 0)),
        ],
        out_specs=pl.BlockSpec((1, 2, th, w), lambda b, t: (b, 0, t, 0)),
        compiler_params=_cparams(vmem, ndims=2),
    )(scal, change.astype(jnp.float32), ryu, rxu)


def change_detection_forward(params, xa, xb, inplanes=8):
    # model.forward(xa, xb, tta=False) -> forward_once; dual_label=False and
    # auxiliary_head=False so only `out1` logits are produced.
    # TODO(synk): forward_tta multi-scale loop not implemented (tta=False path).
    del inplanes
    assert xa.shape == xb.shape, "The two images are not the same size."
    batch, _, h_in, w_in = xa.shape
    x = jnp.concatenate([xa, xb], axis=0).astype(jnp.bfloat16)   # shared-weight
    x_cf = jnp.transpose(x, (1, 0, 2, 3))              # (3, 2B, H, W) channels-first
    feats = backbone_forward(params, x_cf)             # one pass for both images
    change = neck_forward(params, feats, batch)
    return head_forward(params, change, (h_in, w_in))  # (B, 2, H, W) NCHW f32


def ensemble_forward(params_list, xa, xb, method="avg2", inplanes=8):
    # EnsembleModel.forward: tta=False, each model returns single logits,
    # dl=False -> return cd_pred1 only.
    # TODO(synk): ScaleInOutput resize treated as identity (input_size equals
    # the runtime resolution); 'vote' method not implemented.
    # TODO(synk): members could be stacked into one batched pass; kept as a
    # loop since member weights differ and shapes here are small.
    if "avg" not in method:
        raise NotImplementedError(method)
    out1 = 0.0
    for p in params_list:
        logits = change_detection_forward(p, xa, xb, inplanes=inplanes)
        if method == "avg2":
            logits = jax.nn.softmax(logits, axis=1)
        out1 = out1 + logits
    return jnp.argmax(out1, axis=1)                    # cd_pred1: (B, H, W)


# ----------------------------------------------------------------------------
# Deterministic parameter init (Kaiming-normal-ish weights in PyTorch-style
# (out, in) layout, zero biases), mirroring the module's _init_weight.
# ----------------------------------------------------------------------------
def init_params(key, inplanes=8, in_ch=3):
    chans = [inplanes, 2 * inplanes, 4 * inplanes, 8 * inplanes]
    stage_in = [in_ch * 16, chans[0] * 4, chans[1] * 4, chans[2] * 4]
    p = {}
    k = key

    def nxt():
        nonlocal k
        k, sub = jax.random.split(k)
        return sub

    for i in range(4):
        p[f"stage{i}_w"] = jax.random.normal(
            nxt(), (chans[i], stage_in[i]), jnp.float32) * (2.0 / stage_in[i]) ** 0.5
        p[f"stage{i}_b"] = jnp.zeros((chans[i],), jnp.float32)
        p[f"neck_proj{i}_w"] = jax.random.normal(
            nxt(), (inplanes, chans[i]), jnp.float32) * (2.0 / chans[i]) ** 0.5
        p[f"neck_proj{i}_b"] = jnp.zeros((inplanes,), jnp.float32)
    p["neck_out_w"] = jax.random.normal(
        nxt(), (1, inplanes), jnp.float32) * (2.0 / inplanes) ** 0.5
    p["neck_out_b"] = jnp.zeros((1,), jnp.float32)
    p["head_c3_w"] = jax.random.normal(nxt(), (9,), jnp.float32) * (2.0 / 9.0) ** 0.5
    p["head_c3_b"] = jnp.zeros((1,), jnp.float32)
    p["head_c1_w"] = jax.random.normal(nxt(), (2,), jnp.float32) * (2.0 / 1.0) ** 0.5
    p["head_c1_b"] = jnp.zeros((2,), jnp.float32)
    return p


if __name__ == "__main__":
    key = jax.random.PRNGKey(0)
    kp1, kp2, ka, kb = jax.random.split(key, 4)

    inplanes = 8                       # e.g. "dshaformer_b8"
    B, H, W = 2, 32, 32                # small, divisible by 32 (strides 4..32)

    params_list = [init_params(kp1, inplanes=inplanes),
                   init_params(kp2, inplanes=inplanes)]
    xa = jax.random.normal(ka, (B, 3, H, W), jnp.float32)
    xb = jax.random.normal(kb, (B, 3, H, W), jnp.float32)

    single_fwd = jax.jit(functools.partial(change_detection_forward,
                                           inplanes=inplanes))
    logits = single_fwd(params_list[0], xa, xb)
    jax.block_until_ready(logits)
    assert logits.shape == (B, 2, H, W), logits.shape
    assert logits.dtype == jnp.float32

    ens_fwd = jax.jit(functools.partial(ensemble_forward,
                                        method="avg2", inplanes=inplanes))
    cd_pred = ens_fwd(params_list, xa, xb)
    jax.block_until_ready(cd_pred)
    assert cd_pred.shape == (B, H, W), cd_pred.shape

    print("KERNEL_OK")
</pallas_src>

<mosaic_0001>
module attributes {stable_mosaic.version = 11 : i64} {
  func.func @_linear_cf_kernel(%arg0: i32, %arg1: memref<8x48xbf16, #tpu.memory_space<vmem>>, %arg2: memref<48x256xbf16, #tpu.memory_space<vmem>>, %arg3: memref<8x1xf32, #tpu.memory_space<vmem>>, %arg4: memref<8x256xbf16, #tpu.memory_space<vmem>>) attributes {dimension_semantics = [#tpu.dimension_semantics<parallel>], iteration_bounds = array<i64: 1>, scalar_prefetch = 0 : i64, scratch_operands = 0 : i64, tpu.core_type = #tpu.core_type<tc>, window_params = [{pipeline_mode = #tpu.pipeline_mode<synchronous>, transform_indices = @transform_0, window_bounds = array<i64: 8, 48>}, {transform_indices = @transform_1, window_bounds = array<i64: 48, 256>}, {pipeline_mode = #tpu.pipeline_mode<synchronous>, transform_indices = @transform_2, window_bounds = array<i64: 8, 1>}, {transform_indices = @transform_3, window_bounds = array<i64: 8, 256>}]} {
    %c0 = arith.constant 0 : index
    %c0_0 = arith.constant 0 : index
    %0 = vector.load %arg1[%c0, %c0_0] : memref<8x48xbf16, #tpu.memory_space<vmem>>, vector<8x48xbf16>
    %c0_1 = arith.constant 0 : index
    %c0_2 = arith.constant 0 : index
    %1 = vector.load %arg2[%c0_1, %c0_2] : memref<48x256xbf16, #tpu.memory_space<vmem>>, vector<48x256xbf16>
    %cst = arith.constant dense<0.000000e+00> : vector<8x256xf32>
    %2 = tpu.matmul %0, %1, %cst {dimension_numbers = #tpu.dot_dimension_numbers<[1], [0], [0], [1], [0, 0, 1, 1], [], []>} : vector<8x48xbf16>, vector<48x256xbf16>, vector<8x256xf32> -> vector<8x256xf32>
    %c0_3 = arith.constant 0 : index
    %c0_4 = arith.constant 0 : index
    %3 = vector.load %arg3[%c0_3, %c0_4] : memref<8x1xf32, #tpu.memory_space<vmem>>, vector<8x1xf32>
    %4 = vector.broadcast %3 : vector<8x1xf32> to vector<8x256xf32>
    %5 = arith.addf %2, %4 : vector<8x256xf32>
    %cst_5 = arith.constant 0.000000e+00 : f32
    %6 = vector.broadcast %cst_5 : f32 to vector<8x256xf32>
    %7 = arith.maximumf %5, %6 : vector<8x256xf32>
    %8 = arith.truncf %7 : vector<8x256xf32> to vector<8x256xbf16>
    %c0_6 = arith.constant 0 : index
    %c0_7 = arith.constant 0 : index
    %9 = vector.load %arg4[%c0_6, %c0_7] : memref<8x256xbf16, #tpu.memory_space<vmem>>, vector<8x256xbf16>
    tpu.vector_store %arg4[%c0_6, %c0_7], %8 {strides = array<i32>} : memref<8x256xbf16, #tpu.memory_space<vmem>>, vector<8x256xbf16>,
    return
  }
  func.func @transform_0(%arg0: i32) -> (i32, i32) {
    %c0_i32 = arith.constant 0 : i32
    %c0_i32_0 = arith.constant 0 : i32
    %c0_i32_1 = arith.constant 0 : i32
    return %c0_i32, %c0_i32_0 : i32, i32
  }
  func.func @transform_1(%arg0: i32) -> (i32, i32) {
    %c0_i32 = arith.constant 0 : i32
    %c0_i32_0 = arith.constant 0 : i32
    return %c0_i32, %arg0 : i32, i32
  }
  func.func @transform_2(%arg0: i32) -> (i32, i32) {
    %c0_i32 = arith.constant 0 : i32
    %c0_i32_0 = arith.constant 0 : i32
    %c0_i32_1 = arith.constant 0 : i32
    return %c0_i32, %c0_i32_0 : i32, i32
  }
  func.func @transform_3(%arg0: i32) -> (i32, i32) {
    %c0_i32 = arith.constant 0 : i32
    %c0_i32_0 = arith.constant 0 : i32
    return %c0_i32, %arg0 : i32, i32
  }
}

module attributes {stable_mosaic.version = 11 : i64} {
  func.func @_neck_cf_kernel(%arg0: i32, %arg1: memref<16x32xbf16, #tpu.memory_space<vmem>>, %arg2: memref<16x32xbf16, #tpu.memory_space<vmem>>, %arg3: memref<8x16xbf16, #tpu.memory_space<vmem>>, %arg4: memref<8x1xf32, #tpu.memory_space<vmem>>, %arg5: memref<1x8xf32, #tpu.memory_space<vmem>>, %arg6: memref<1x32xf32, #tpu.memory_space<vmem>>) attributes {dimension_semantics = [#tpu.dimension_semantics<parallel>], iteration_bounds = array<i64: 1>, scalar_prefetch = 0 : i64, scratch_operands = 0 : i64, tpu.core_type = #tpu.core_type<tc>, window_params = [{pipeline_mode = #tpu.pipeline_mode<synchronous>, transform_indices = @transform_0, window_bounds = array<i64: 16, 32>}, {pipeline_mode = #tpu.pipeline_mode<synchronous>, transform_indices = @transform_1, window_bounds = array<i64: 16, 32>}, {pipeline_mode = #tpu.pipeline_mode<synchronous>, transform_indices = @transform_2, window_bounds = array<i64: 8, 16>}, {pipeline_mode = #tpu.pipeline_mode<synchronous>, transform_indices = @transform_3, window_bounds = array<i64: 8, 1>}, {pipeline_mode = #tpu.pipeline_mode<synchronous>, transform_indices = @transform_4, window_bounds = array<i64: 1, 8>}, {transform_indices = @transform_5, window_bounds = array<i64: 1, 32>}]} {
    %c0 = arith.constant 0 : index
    %c0_0 = arith.constant 0 : index
    %0 = vector.load %arg1[%c0, %c0_0] : memref<16x32xbf16, #tpu.memory_space<vmem>>, vector<16x32xbf16>
    %c0_1 = arith.constant 0 : index
    %c0_2 = arith.constant 0 : index
    %1 = vector.load %arg2[%c0_1, %c0_2] : memref<16x32xbf16, #tpu.memory_space<vmem>>, vector<16x32xbf16>
    %2 = arith.subf %0, %1 : vector<16x32xbf16>
    %3 = math.absf %2 : vector<16x32xbf16>
    %c0_3 = arith.constant 0 : index
    %c0_4 = arith.constant 0 : index
    %4 = vector.load %arg3[%c0_3, %c0_4] : memref<8x16xbf16, #tpu.memory_space<vmem>>, vector<8x16xbf16>
    %cst = arith.constant dense<0.000000e+00> : vector<8x32xf32>
    %5 = tpu.matmul %4, %3, %cst {dimension_numbers = #tpu.dot_dimension_numbers<[1], [0], [0], [1], [0, 0, 1, 1], [], []>} : vector<8x16xbf16>, vector<16x32xbf16>, vector<8x32xf32> -> vector<8x32xf32>
    %c0_5 = arith.constant 0 : index
    %c0_6 = arith.constant 0 : index
    %6 = vector.load %arg4[%c0_5, %c0_6] : memref<8x1xf32, #tpu.memory_space<vmem>>, vector<8x1xf32>
    %7 = vector.broadcast %6 : vector<8x1xf32> to vector<8x32xf32>
    %8 = arith.addf %5, %7 : vector<8x32xf32>
    %cst_7 = arith.constant 0.000000e+00 : f32
    %9 = vector.broadcast %cst_7 : f32 to vector<8x32xf32>
    %10 = arith.maximumf %8, %9 : vector<8x32xf32>
    %c0_8 = arith.constant 0 : index
    %c0_9 = arith.constant 0 : index
    %11 = vector.load %arg5[%c0_8, %c0_9] : memref<1x8xf32, #tpu.memory_space<vmem>>, vector<1x8xf32>
    %cst_10 = arith.constant dense<0.000000e+00> : vector<1x32xf32>
    %12 = tpu.matmul %11, %10, %cst_10 {dimension_numbers = #tpu.dot_dimension_numbers<[1], [0], [0], [1], [0, 0, 1, 1], [], []>} : vector<1x8xf32>, vector<8x32xf32>, vector<1x32xf32> -> vector<1x32xf32>
    %c0_11 = arith.constant 0 : index
    %c0_12 = arith.constant 0 : index
    %13 = vector.load %arg6[%c0_11, %c0_12] : memref<1x32xf32, #tpu.memory_space<vmem>>, vector<1x32xf32>
    tpu.vector_store %arg6[%c0_11, %c0_12], %12 {strides = array<i32>} : memref<1x32xf32, #tpu.memory_space<vmem>>, vector<1x32xf32>,
    return
  }
  func.func @transform_0(%arg0: i32) -> (i32, i32) {
    %c0_i32 = arith.constant 0 : i32
    %c0_i32_0 = arith.constant 0 : i32
    %c0_i32_1 = arith.constant 0 : i32
    return %c0_i32, %c0_i32_0 : i32, i32
  }
  func.func @transform_1(%arg0: i32) -> (i32, i32) {
    %c0_i32 = arith.constant 0 : i32
    %c0_i32_0 = arith.constant 0 : i32
    %c0_i32_1 = arith.constant 0 : i32
    return %c0_i32, %c0_i32_0 : i32, i32
  }
  func.func @transform_2(%arg0: i32) -> (i32, i32) {
    %c0_i32 = arith.constant 0 : i32
    %c0_i32_0 = arith.constant 0 : i32
    %c0_i32_1 = arith.constant 0 : i32
    return %c0_i32, %c0_i32_0 : i32, i32
  }
  func.func @transform_3(%arg0: i32) -> (i32, i32) {
    %c0_i32 = arith.constant 0 : i32
    %c0_i32_0 = arith.constant 0 : i32
    %c0_i32_1 = arith.constant 0 : i32
    return %c0_i32, %c0_i32_0 : i32, i32
  }
  func.func @transform_4(%arg0: i32) -> (i32, i32) {
    %c0_i32 = arith.constant 0 : i32
    %c0_i32_0 = arith.constant 0 : i32
    %c0_i32_1 = arith.constant 0 : i32
    return %c0_i32, %c0_i32_0 : i32, i32
  }
  func.func @transform_5(%arg0: i32) -> (i32, i32) {
    %c0_i32 = arith.constant 0 : i32
    %c0_i32_0 = arith.constant 0 : i32
    return %c0_i32, %arg0 : i32, i32
  }
}

module attributes {stable_mosaic.version = 11 : i64} {
  func.func @_linear_cf_kernel(%arg0: i32, %arg1: memref<16x32xbf16, #tpu.memory_space<vmem>>, %arg2: memref<32x64xbf16, #tpu.memory_space<vmem>>, %arg3: memref<16x1xf32, #tpu.memory_space<vmem>>, %arg4: memref<16x64xbf16, #tpu.memory_space<vmem>>) attributes {dimension_semantics = [#tpu.dimension_semantics<parallel>], iteration_bounds = array<i64: 1>, scalar_prefetch = 0 : i64, scratch_operands = 0 : i64, tpu.core_type = #tpu.core_type<tc>, window_params = [{pipeline_mode = #tpu.pipeline_mode<synchronous>, transform_indices = @transform_0, window_bounds = array<i64: 16, 32>}, {transform_indices = @transform_1, window_bounds = array<i64: 32, 64>}, {pipeline_mode = #tpu.pipeline_mode<synchronous>, transform_indices = @transform_2, window_bounds = array<i64: 16, 1>}, {transform_indices = @transform_3, window_bounds = array<i64: 16, 64>}]} {
    %c0 = arith.constant 0 : index
    %c0_0 = arith.constant 0 : index
    %0 = vector.load %arg1[%c0, %c0_0] : memref<16x32xbf16, #tpu.memory_space<vmem>>, vector<16x32xbf16>
    %c0_1 = arith.constant 0 : index
    %c0_2 = arith.constant 0 : index
    %1 = vector.load %arg2[%c0_1, %c0_2] : memref<32x64xbf16, #tpu.memory_space<vmem>>, vector<32x64xbf16>
    %cst = arith.constant dense<0.000000e+00> : vector<16x64xf32>
    %2 = tpu.matmul %0, %1, %cst {dimension_numbers = #tpu.dot_dimension_numbers<[1], [0], [0], [1], [0, 0, 1, 1], [], []>} : vector<16x32xbf16>, vector<32x64xbf16>, vector<16x64xf32> -> vector<16x64xf32>
    %c0_3 = arith.constant 0 : index
    %c0_4 = arith.constant 0 : index
    %3 = vector.load %arg3[%c0_3, %c0_4] : memref<16x1xf32, #tpu.memory_space<vmem>>, vector<16x1xf32>
    %4 = vector.broadcast %3 : vector<16x1xf32> to vector<16x64xf32>
    %5 = arith.addf %2, %4 : vector<16x64xf32>
    %cst_5 = arith.constant 0.000000e+00 : f32
    %6 = vector.broadcast %cst_5 : f32 to vector<16x64xf32>
    %7 = arith.maximumf %5, %6 : vector<16x64xf32>
    %8 = arith.truncf %7 : vector<16x64xf32> to vector<16x64xbf16>
    %c0_6 = arith.constant 0 : index
    %c0_7 = arith.constant 0 : index
    %9 = vector.load %arg4[%c0_6, %c0_7] : memref<16x64xbf16, #tpu.memory_space<vmem>>, vector<16x64xbf16>
    tpu.vector_store %arg4[%c0_6, %c0_7], %8 {strides = array<i32>} : memref<16x64xbf16, #tpu.memory_space<vmem>>, vector<16x64xbf16>,
    return
  }
  func.func @transform_0(%arg0: i32) -> (i32, i32) {
    %c0_i32 = arith.constant 0 : i32
    %c0_i32_0 = arith.constant 0 : i32
    %c0_i32_1 = arith.constant 0 : i32
    return %c0_i32, %c0_i32_0 : i32, i32
  }
  func.func @transform_1(%arg0: i32) -> (i32, i32) {
    %c0_i32 = arith.constant 0 : i32
    %c0_i32_0 = arith.constant 0 : i32
    return %c0_i32, %arg0 : i32, i32
  }
  func.func @transform_2(%arg0: i32) -> (i32, i32) {
    %c0_i32 = arith.constant 0 : i32
    %c0_i32_0 = arith.constant 0 : i32
    %c0_i32_1 = arith.constant 0 : i32
    return %c0_i32, %c0_i32_0 : i32, i32
  }
  func.func @transform_3(%arg0: i32) -> (i32, i32) {
    %c0_i32 = arith.constant 0 : i32
    %c0_i32_0 = arith.constant 0 : i32
    return %c0_i32, %arg0 : i32, i32
  }
}

module attributes {stable_mosaic.version = 11 : i64} {
  func.func @_neck_cf_kernel(%arg0: i32, %arg1: memref<8x128xbf16, #tpu.memory_space<vmem>>, %arg2: memref<8x128xbf16, #tpu.memory_space<vmem>>, %arg3: memref<8x8xbf16, #tpu.memory_space<vmem>>, %arg4: memref<8x1xf32, #tpu.memory_space<vmem>>, %arg5: memref<1x8xf32, #tpu.memory_space<vmem>>, %arg6: memref<1x128xf32, #tpu.memory_space<vmem>>) attributes {dimension_semantics = [#tpu.dimension_semantics<parallel>], iteration_bounds = array<i64: 1>, scalar_prefetch = 0 : i64, scratch_operands = 0 : i64, tpu.core_type = #tpu.core_type<tc>, window_params = [{transform_indices = @transform_0, window_bounds = array<i64: 8, 128>}, {transform_indices = @transform_1, window_bounds = array<i64: 8, 128>}, {pipeline_mode = #tpu.pipeline_mode<synchronous>, transform_indices = @transform_2, window_bounds = array<i64: 8, 8>}, {pipeline_mode = #tpu.pipeline_mode<synchronous>, transform_indices = @transform_3, window_bounds = array<i64: 8, 1>}, {pipeline_mode = #tpu.pipeline_mode<synchronous>, transform_indices = @transform_4, window_bounds = array<i64: 1, 8>}, {transform_indices = @transform_5, window_bounds = array<i64: 1, 128>}]} {
    %c0 = arith.constant 0 : index
    %c0_0 = arith.constant 0 : index
    %0 = vector.load %arg1[%c0, %c0_0] : memref<8x128xbf16, #tpu.memory_space<vmem>>, vector<8x128xbf16>
    %c0_1 = arith.constant 0 : index
    %c0_2 = arith.constant 0 : index
    %1 = vector.load %arg2[%c0_1, %c0_2] : memref<8x128xbf16, #tpu.memory_space<vmem>>, vector<8x128xbf16>
    %2 = arith.subf %0, %1 : vector<8x128xbf16>
    %3 = math.absf %2 : vector<8x128xbf16>
    %c0_3 = arith.constant 0 : index
    %c0_4 = arith.constant 0 : index
    %4 = vector.load %arg3[%c0_3, %c0_4] : memref<8x8xbf16, #tpu.memory_space<vmem>>, vector<8x8xbf16>
    %cst = arith.constant dense<0.000000e+00> : vector<8x128xf32>
    %5 = tpu.matmul %4, %3, %cst {dimension_numbers = #tpu.dot_dimension_numbers<[1], [0], [0], [1], [0, 0, 1, 1], [], []>} : vector<8x8xbf16>, vector<8x128xbf16>, vector<8x128xf32> -> vector<8x128xf32>
    %c0_5 = arith.constant 0 : index
    %c0_6 = arith.constant 0 : index
    %6 = vector.load %arg4[%c0_5, %c0_6] : memref<8x1xf32, #tpu.memory_space<vmem>>, vector<8x1xf32>
    %7 = vector.broadcast %6 : vector<8x1xf32> to vector<8x128xf32>
    %8 = arith.addf %5, %7 : vector<8x128xf32>
    %cst_7 = arith.constant 0.000000e+00 : f32
    %9 = vector.broadcast %cst_7 : f32 to vector<8x128xf32>
    %10 = arith.maximumf %8, %9 : vector<8x128xf32>
    %c0_8 = arith.constant 0 : index
    %c0_9 = arith.constant 0 : index
    %11 = vector.load %arg5[%c0_8, %c0_9] : memref<1x8xf32, #tpu.memory_space<vmem>>, vector<1x8xf32>
    %cst_10 = arith.constant dense<0.000000e+00> : vector<1x128xf32>
    %12 = tpu.matmul %11, %10, %cst_10 {dimension_numbers = #tpu.dot_dimension_numbers<[1], [0], [0], [1], [0, 0, 1, 1], [], []>} : vector<1x8xf32>, vector<8x128xf32>, vector<1x128xf32> -> vector<1x128xf32>
    %c0_11 = arith.constant 0 : index
    %c0_12 = arith.constant 0 : index
    %13 = vector.load %arg6[%c0_11, %c0_12] : memref<1x128xf32, #tpu.memory_space<vmem>>, vector<1x128xf32>
    tpu.vector_store %arg6[%c0_11, %c0_12], %12 {strides = array<i32>} : memref<1x128xf32, #tpu.memory_space<vmem>>, vector<1x128xf32>,
    return
  }
  func.func @transform_0(%arg0: i32) -> (i32, i32) {
    %c0_i32 = arith.constant 0 : i32
    %c0_i32_0 = arith.constant 0 : i32
    return %c0_i32, %arg0 : i32, i32
  }
  func.func @transform_1(%arg0: i32) -> (i32, i32) {
    %c1_i32 = arith.constant 1 : i32
    %0 = arith.addi %arg0, %c1_i32 : i32
    %c0_i32 = arith.constant 0 : i32
    %c0_i32_0 = arith.constant 0 : i32
    return %c0_i32, %0 : i32, i32
  }
  func.func @transform_2(%arg0: i32) -> (i32, i32) {
    %c0_i32 = arith.constant 0 : i32
    %c0_i32_0 = arith.constant 0 : i32
    %c0_i32_1 = arith.constant 0 : i32
    return %c0_i32, %c0_i32_0 : i32, i32
  }
  func.func @transform_3(%arg0: i32) -> (i32, i32) {
    %c0_i32 = arith.constant 0 : i32
    %c0_i32_0 = arith.constant 0 : i32
    %c0_i32_1 = arith.constant 0 : i32
    return %c0_i32, %c0_i32_0 : i32, i32
  }
  func.func @transform_4(%arg0: i32) -> (i32, i32) {
    %c0_i32 = arith.constant 0 : i32
    %c0_i32_0 = arith.constant 0 : i32
    %c0_i32_1 = arith.constant 0 : i32
    return %c0_i32, %c0_i32_0 : i32, i32
  }
  func.func @transform_5(%arg0: i32) -> (i32, i32) {
    %c0_i32 = arith.constant 0 : i32
    %c0_i32_0 = arith.constant 0 : i32
    return %c0_i32, %arg0 : i32, i32
  }
}

module attributes {stable_mosaic.version = 11 : i64} {
  func.func @_linear_cf_kernel(%arg0: i32, %arg1: memref<32x64xbf16, #tpu.memory_space<vmem>>, %arg2: memref<64x16xbf16, #tpu.memory_space<vmem>>, %arg3: memref<32x1xf32, #tpu.memory_space<vmem>>, %arg4: memref<32x16xbf16, #tpu.memory_space<vmem>>) attributes {dimension_semantics = [#tpu.dimension_semantics<parallel>], iteration_bounds = array<i64: 1>, scalar_prefetch = 0 : i64, scratch_operands = 0 : i64, tpu.core_type = #tpu.core_type<tc>, window_params = [{pipeline_mode = #tpu.pipeline_mode<synchronous>, transform_indices = @transform_0, window_bounds = array<i64: 32, 64>}, {transform_indices = @transform_1, window_bounds = array<i64: 64, 16>}, {pipeline_mode = #tpu.pipeline_mode<synchronous>, transform_indices = @transform_2, window_bounds = array<i64: 32, 1>}, {transform_indices = @transform_3, window_bounds = array<i64: 32, 16>}]} {
    %c0 = arith.constant 0 : index
    %c0_0 = arith.constant 0 : index
    %0 = vector.load %arg1[%c0, %c0_0] : memref<32x64xbf16, #tpu.memory_space<vmem>>, vector<32x64xbf16>
    %c0_1 = arith.constant 0 : index
    %c0_2 = arith.constant 0 : index
    %1 = vector.load %arg2[%c0_1, %c0_2] : memref<64x16xbf16, #tpu.memory_space<vmem>>, vector<64x16xbf16>
    %cst = arith.constant dense<0.000000e+00> : vector<32x16xf32>
    %2 = tpu.matmul %0, %1, %cst {dimension_numbers = #tpu.dot_dimension_numbers<[1], [0], [0], [1], [0, 0, 1, 1], [], []>} : vector<32x64xbf16>, vector<64x16xbf16>, vector<32x16xf32> -> vector<32x16xf32>
    %c0_3 = arith.constant 0 : index
    %c0_4 = arith.constant 0 : index
    %3 = vector.load %arg3[%c0_3, %c0_4] : memref<32x1xf32, #tpu.memory_space<vmem>>, vector<32x1xf32>
    %4 = vector.broadcast %3 : vector<32x1xf32> to vector<32x16xf32>
    %5 = arith.addf %2, %4 : vector<32x16xf32>
    %cst_5 = arith.constant 0.000000e+00 : f32
    %6 = vector.broadcast %cst_5 : f32 to vector<32x16xf32>
    %7 = arith.maximumf %5, %6 : vector<32x16xf32>
    %8 = arith.truncf %7 : vector<32x16xf32> to vector<32x16xbf16>
    %c0_6 = arith.constant 0 : index
    %c0_7 = arith.constant 0 : index
    %9 = vector.load %arg4[%c0_6, %c0_7] : memref<32x16xbf16, #tpu.memory_space<vmem>>, vector<32x16xbf16>
    tpu.vector_store %arg4[%c0_6, %c0_7], %8 {strides = array<i32>} : memref<32x16xbf16, #tpu.memory_space<vmem>>, vector<32x16xbf16>,
    return
  }
  func.func @transform_0(%arg0: i32) -> (i32, i32) {
    %c0_i32 = arith.constant 0 : i32
    %c0_i32_0 = arith.constant 0 : i32
    %c0_i32_1 = arith.constant 0 : i32
    return %c0_i32, %c0_i32_0 : i32, i32
  }
  func.func @transform_1(%arg0: i32) -> (i32, i32) {
    %c0_i32 = arith.constant 0 : i32
    %c0_i32_0 = arith.constant 0 : i32
    return %c0_i32, %arg0 : i32, i32
  }
  func.func @transform_2(%arg0: i32) -> (i32, i32) {
    %c0_i32 = arith.constant 0 : i32
    %c0_i32_0 = arith.constant 0 : i32
    %c0_i32_1 = arith.constant 0 : i32
    return %c0_i32, %c0_i32_0 : i32, i32
  }
  func.func @transform_3(%arg0: i32) -> (i32, i32) {
    %c0_i32 = arith.constant 0 : i32
    %c0_i32_0 = arith.constant 0 : i32
    return %c0_i32, %arg0 : i32, i32
  }
}

module attributes {stable_mosaic.version = 11 : i64} {
  func.func @_neck_cf_kernel(%arg0: i32, %arg1: memref<32x8xbf16, #tpu.memory_space<vmem>>, %arg2: memref<32x8xbf16, #tpu.memory_space<vmem>>, %arg3: memref<8x32xbf16, #tpu.memory_space<vmem>>, %arg4: memref<8x1xf32, #tpu.memory_space<vmem>>, %arg5: memref<1x8xf32, #tpu.memory_space<vmem>>, %arg6: memref<1x8xf32, #tpu.memory_space<vmem>>) attributes {dimension_semantics = [#tpu.dimension_semantics<parallel>], iteration_bounds = array<i64: 1>, scalar_prefetch = 0 : i64, scratch_operands = 0 : i64, tpu.core_type = #tpu.core_type<tc>, window_params = [{pipeline_mode = #tpu.pipeline_mode<synchronous>, transform_indices = @transform_0, window_bounds = array<i64: 32, 8>}, {pipeline_mode = #tpu.pipeline_mode<synchronous>, transform_indices = @transform_1, window_bounds = array<i64: 32, 8>}, {pipeline_mode = #tpu.pipeline_mode<synchronous>, transform_indices = @transform_2, window_bounds = array<i64: 8, 32>}, {pipeline_mode = #tpu.pipeline_mode<synchronous>, transform_indices = @transform_3, window_bounds = array<i64: 8, 1>}, {pipeline_mode = #tpu.pipeline_mode<synchronous>, transform_indices = @transform_4, window_bounds = array<i64: 1, 8>}, {transform_indices = @transform_5, window_bounds = array<i64: 1, 8>}]} {
    %c0 = arith.constant 0 : index
    %c0_0 = arith.constant 0 : index
    %0 = vector.load %arg1[%c0, %c0_0] : memref<32x8xbf16, #tpu.memory_space<vmem>>, vector<32x8xbf16>
    %c0_1 = arith.constant 0 : index
    %c0_2 = arith.constant 0 : index
    %1 = vector.load %arg2[%c0_1, %c0_2] : memref<32x8xbf16, #tpu.memory_space<vmem>>, vector<32x8xbf16>
    %2 = arith.subf %0, %1 : vector<32x8xbf16>
    %3 = math.absf %2 : vector<32x8xbf16>
    %c0_3 = arith.constant 0 : index
    %c0_4 = arith.constant 0 : index
    %4 = vector.load %arg3[%c0_3, %c0_4] : memref<8x32xbf16, #tpu.memory_space<vmem>>, vector<8x32xbf16>
    %cst = arith.constant dense<0.000000e+00> : vector<8x8xf32>
    %5 = tpu.matmul %4, %3, %cst {dimension_numbers = #tpu.dot_dimension_numbers<[1], [0], [0], [1], [0, 0, 1, 1], [], []>} : vector<8x32xbf16>, vector<32x8xbf16>, vector<8x8xf32> -> vector<8x8xf32>
    %c0_5 = arith.constant 0 : index
    %c0_6 = arith.constant 0 : index
    %6 = vector.load %arg4[%c0_5, %c0_6] : memref<8x1xf32, #tpu.memory_space<vmem>>, vector<8x1xf32>
    %7 = vector.broadcast %6 : vector<8x1xf32> to vector<8x8xf32>
    %8 = arith.addf %5, %7 : vector<8x8xf32>
    %cst_7 = arith.constant 0.000000e+00 : f32
    %9 = vector.broadcast %cst_7 : f32 to vector<8x8xf32>
    %10 = arith.maximumf %8, %9 : vector<8x8xf32>
    %c0_8 = arith.constant 0 : index
    %c0_9 = arith.constant 0 : index
    %11 = vector.load %arg5[%c0_8, %c0_9] : memref<1x8xf32, #tpu.memory_space<vmem>>, vector<1x8xf32>
    %cst_10 = arith.constant dense<0.000000e+00> : vector<1x8xf32>
    %12 = tpu.matmul %11, %10, %cst_10 {dimension_numbers = #tpu.dot_dimension_numbers<[1], [0], [0], [1], [0, 0, 1, 1], [], []>} : vector<1x8xf32>, vector<8x8xf32>, vector<1x8xf32> -> vector<1x8xf32>
    %c0_11 = arith.constant 0 : index
    %c0_12 = arith.constant 0 : index
    %13 = vector.load %arg6[%c0_11, %c0_12] : memref<1x8xf32, #tpu.memory_space<vmem>>, vector<1x8xf32>
    tpu.vector_store %arg6[%c0_11, %c0_12], %12 {strides = array<i32>} : memref<1x8xf32, #tpu.memory_space<vmem>>, vector<1x8xf32>,
    return
  }
  func.func @transform_0(%arg0: i32) -> (i32, i32) {
    %c0_i32 = arith.constant 0 : i32
    %c0_i32_0 = arith.constant 0 : i32
    %c0_i32_1 = arith.constant 0 : i32
    return %c0_i32, %c0_i32_0 : i32, i32
  }
  func.func @transform_1(%arg0: i32) -> (i32, i32) {
    %c0_i32 = arith.constant 0 : i32
    %c0_i32_0 = arith.constant 0 : i32
    %c0_i32_1 = arith.constant 0 : i32
    return %c0_i32, %c0_i32_0 : i32, i32
  }
  func.func @transform_2(%arg0: i32) -> (i32, i32) {
    %c0_i32 = arith.constant 0 : i32
    %c0_i32_0 = arith.constant 0 : i32
    %c0_i32_1 = arith.constant 0 : i32
    return %c0_i32, %c0_i32_0 : i32, i32
  }
  func.func @transform_3(%arg0: i32) -> (i32, i32) {
    %c0_i32 = arith.constant 0 : i32
    %c0_i32_0 = arith.constant 0 : i32
    %c0_i32_1 = arith.constant 0 : i32
    return %c0_i32, %c0_i32_0 : i32, i32
  }
  func.func @transform_4(%arg0: i32) -> (i32, i32) {
    %c0_i32 = arith.constant 0 : i32
    %c0_i32_0 = arith.constant 0 : i32
    %c0_i32_1 = arith.constant 0 : i32
    return %c0_i32, %c0_i32_0 : i32, i32
  }
  func.func @transform_5(%arg0: i32) -> (i32, i32) {
    %c0_i32 = arith.constant 0 : i32
    %c0_i32_0 = arith.constant 0 : i32
    return %c0_i32, %arg0 : i32, i32
  }
}

module attributes {stable_mosaic.version = 11 : i64} {
  func.func @_linear_cf_kernel(%arg0: i32, %arg1: memref<64x128xbf16, #tpu.memory_space<vmem>>, %arg2: memref<128x4xbf16, #tpu.memory_space<vmem>>, %arg3: memref<64x1xf32, #tpu.memory_space<vmem>>, %arg4: memref<64x4xbf16, #tpu.memory_space<vmem>>) attributes {dimension_semantics = [#tpu.dimension_semantics<parallel>], iteration_bounds = array<i64: 1>, scalar_prefetch = 0 : i64, scratch_operands = 0 : i64, tpu.core_type = #tpu.core_type<tc>, window_params = [{pipeline_mode = #tpu.pipeline_mode<synchronous>, transform_indices = @transform_0, window_bounds = array<i64: 64, 128>}, {transform_indices = @transform_1, window_bounds = array<i64: 128, 4>}, {pipeline_mode = #tpu.pipeline_mode<synchronous>, transform_indices = @transform_2, window_bounds = array<i64: 64, 1>}, {transform_indices = @transform_3, window_bounds = array<i64: 64, 4>}]} {
    %c0 = arith.constant 0 : index
    %c0_0 = arith.constant 0 : index
    %0 = vector.load %arg1[%c0, %c0_0] : memref<64x128xbf16, #tpu.memory_space<vmem>>, vector<64x128xbf16>
    %c0_1 = arith.constant 0 : index
    %c0_2 = arith.constant 0 : index
    %1 = vector.load %arg2[%c0_1, %c0_2] : memref<128x4xbf16, #tpu.memory_space<vmem>>, vector<128x4xbf16>
    %cst = arith.constant dense<0.000000e+00> : vector<64x4xf32>
    %2 = tpu.matmul %0, %1, %cst {dimension_numbers = #tpu.dot_dimension_numbers<[1], [0], [0], [1], [0, 0, 1, 1], [], []>} : vector<64x128xbf16>, vector<128x4xbf16>, vector<64x4xf32> -> vector<64x4xf32>
    %c0_3 = arith.constant 0 : index
    %c0_4 = arith.constant 0 : index
    %3 = vector.load %arg3[%c0_3, %c0_4] : memref<64x1xf32, #tpu.memory_space<vmem>>, vector<64x1xf32>
    %4 = vector.broadcast %3 : vector<64x1xf32> to vector<64x4xf32>
    %5 = arith.addf %2, %4 : vector<64x4xf32>
    %cst_5 = arith.constant 0.000000e+00 : f32
    %6 = vector.broadcast %cst_5 : f32 to vector<64x4xf32>
    %7 = arith.maximumf %5, %6 : vector<64x4xf32>
    %8 = arith.truncf %7 : vector<64x4xf32> to vector<64x4xbf16>
    %c0_6 = arith.constant 0 : index
    %c0_7 = arith.constant 0 : index
    %9 = vector.load %arg4[%c0_6, %c0_7] : memref<64x4xbf16, #tpu.memory_space<vmem>>, vector<64x4xbf16>
    tpu.vector_store %arg4[%c0_6, %c0_7], %8 {strides = array<i32>} : memref<64x4xbf16, #tpu.memory_space<vmem>>, vector<64x4xbf16>,
    return
  }
  func.func @transform_0(%arg0: i32) -> (i32, i32) {
    %c0_i32 = arith.constant 0 : i32
    %c0_i32_0 = arith.constant 0 : i32
    %c0_i32_1 = arith.constant 0 : i32
    return %c0_i32, %c0_i32_0 : i32, i32
  }
  func.func @transform_1(%arg0: i32) -> (i32, i32) {
    %c0_i32 = arith.constant 0 : i32
    %c0_i32_0 = arith.constant 0 : i32
    return %c0_i32, %arg0 : i32, i32
  }
  func.func @transform_2(%arg0: i32) -> (i32, i32) {
    %c0_i32 = arith.constant 0 : i32
    %c0_i32_0 = arith.constant 0 : i32
    %c0_i32_1 = arith.constant 0 : i32
    return %c0_i32, %c0_i32_0 : i32, i32
  }
  func.func @transform_3(%arg0: i32) -> (i32, i32) {
    %c0_i32 = arith.constant 0 : i32
    %c0_i32_0 = arith.constant 0 : i32
    return %c0_i32, %arg0 : i32, i32
  }
}

module attributes {stable_mosaic.version = 11 : i64} {
  func.func @_neck_cf_kernel(%arg0: i32, %arg1: memref<64x2xbf16, #tpu.memory_space<vmem>>, %arg2: memref<64x2xbf16, #tpu.memory_space<vmem>>, %arg3: memref<8x64xbf16, #tpu.memory_space<vmem>>, %arg4: memref<8x1xf32, #tpu.memory_space<vmem>>, %arg5: memref<1x8xf32, #tpu.memory_space<vmem>>, %arg6: memref<1x2xf32, #tpu.memory_space<vmem>>) attributes {dimension_semantics = [#tpu.dimension_semantics<parallel>], iteration_bounds = array<i64: 1>, scalar_prefetch = 0 : i64, scratch_operands = 0 : i64, tpu.core_type = #tpu.core_type<tc>, window_params = [{pipeline_mode = #tpu.pipeline_mode<synchronous>, transform_indices = @transform_0, window_bounds = array<i64: 64, 2>}, {pipeline_mode = #tpu.pipeline_mode<synchronous>, transform_indices = @transform_1, window_bounds = array<i64: 64, 2>}, {pipeline_mode = #tpu.pipeline_mode<synchronous>, transform_indices = @transform_2, window_bounds = array<i64: 8, 64>}, {pipeline_mode = #tpu.pipeline_mode<synchronous>, transform_indices = @transform_3, window_bounds = array<i64: 8, 1>}, {pipeline_mode = #tpu.pipeline_mode<synchronous>, transform_indices = @transform_4, window_bounds = array<i64: 1, 8>}, {transform_indices = @transform_5, window_bounds = array<i64: 1, 2>}]} {
    %c0 = arith.constant 0 : index
    %c0_0 = arith.constant 0 : index
    %0 = vector.load %arg1[%c0, %c0_0] : memref<64x2xbf16, #tpu.memory_space<vmem>>, vector<64x2xbf16>
    %c0_1 = arith.constant 0 : index
    %c0_2 = arith.constant 0 : index
    %1 = vector.load %arg2[%c0_1, %c0_2] : memref<64x2xbf16, #tpu.memory_space<vmem>>, vector<64x2xbf16>
    %2 = arith.subf %0, %1 : vector<64x2xbf16>
    %3 = math.absf %2 : vector<64x2xbf16>
    %c0_3 = arith.constant 0 : index
    %c0_4 = arith.constant 0 : index
    %4 = vector.load %arg3[%c0_3, %c0_4] : memref<8x64xbf16, #tpu.memory_space<vmem>>, vector<8x64xbf16>
    %cst = arith.constant dense<0.000000e+00> : vector<8x2xf32>
    %5 = tpu.matmul %4, %3, %cst {dimension_numbers = #tpu.dot_dimension_numbers<[1], [0], [0], [1], [0, 0, 1, 1], [], []>} : vector<8x64xbf16>, vector<64x2xbf16>, vector<8x2xf32> -> vector<8x2xf32>
    %c0_5 = arith.constant 0 : index
    %c0_6 = arith.constant 0 : index
    %6 = vector.load %arg4[%c0_5, %c0_6] : memref<8x1xf32, #tpu.memory_space<vmem>>, vector<8x1xf32>
    %7 = vector.broadcast %6 : vector<8x1xf32> to vector<8x2xf32>
    %8 = arith.addf %5, %7 : vector<8x2xf32>
    %cst_7 = arith.constant 0.000000e+00 : f32
    %9 = vector.broadcast %cst_7 : f32 to vector<8x2xf32>
    %10 = arith.maximumf %8, %9 : vector<8x2xf32>
    %c0_8 = arith.constant 0 : index
    %c0_9 = arith.constant 0 : index
    %11 = vector.load %arg5[%c0_8, %c0_9] : memref<1x8xf32, #tpu.memory_space<vmem>>, vector<1x8xf32>
    %cst_10 = arith.constant dense<0.000000e+00> : vector<1x2xf32>
    %12 = tpu.matmul %11, %10, %cst_10 {dimension_numbers = #tpu.dot_dimension_numbers<[1], [0], [0], [1], [0, 0, 1, 1], [], []>} : vector<1x8xf32>, vector<8x2xf32>, vector<1x2xf32> -> vector<1x2xf32>
    %c0_11 = arith.constant 0 : index
    %c0_12 = arith.constant 0 : index
    %13 = vector.load %arg6[%c0_11, %c0_12] : memref<1x2xf32, #tpu.memory_space<vmem>>, vector<1x2xf32>
    tpu.vector_store %arg6[%c0_11, %c0_12], %12 {strides = array<i32>} : memref<1x2xf32, #tpu.memory_space<vmem>>, vector<1x2xf32>,
    return
  }
  func.func @transform_0(%arg0: i32) -> (i32, i32) {
    %c0_i32 = arith.constant 0 : i32
    %c0_i32_0 = arith.constant 0 : i32
    %c0_i32_1 = arith.constant 0 : i32
    return %c0_i32, %c0_i32_0 : i32, i32
  }
  func.func @transform_1(%arg0: i32) -> (i32, i32) {
    %c0_i32 = arith.constant 0 : i32
    %c0_i32_0 = arith.constant 0 : i32
    %c0_i32_1 = arith.constant 0 : i32
    return %c0_i32, %c0_i32_0 : i32, i32
  }
  func.func @transform_2(%arg0: i32) -> (i32, i32) {
    %c0_i32 = arith.constant 0 : i32
    %c0_i32_0 = arith.constant 0 : i32
    %c0_i32_1 = arith.constant 0 : i32
    return %c0_i32, %c0_i32_0 : i32, i32
  }
  func.func @transform_3(%arg0: i32) -> (i32, i32) {
    %c0_i32 = arith.constant 0 : i32
    %c0_i32_0 = arith.constant 0 : i32
    %c0_i32_1 = arith.constant 0 : i32
    return %c0_i32, %c0_i32_0 : i32, i32
  }
  func.func @transform_4(%arg0: i32) -> (i32, i32) {
    %c0_i32 = arith.constant 0 : i32
    %c0_i32_0 = arith.constant 0 : i32
    %c0_i32_1 = arith.constant 0 : i32
    return %c0_i32, %c0_i32_0 : i32, i32
  }
  func.func @transform_5(%arg0: i32) -> (i32, i32) {
    %c0_i32 = arith.constant 0 : i32
    %c0_i32_0 = arith.constant 0 : i32
    return %c0_i32, %arg0 : i32, i32
  }
}

module attributes {stable_mosaic.version = 11 : i64} {
  func.func @_head_kernel(%arg0: i32, %arg1: i32, %arg2: memref<14xf32, #tpu.memory_space<smem>>, %arg3: memref<1x8x8xf32, #tpu.memory_space<vmem>>, %arg4: memref<32x8xbf16, #tpu.memory_space<vmem>>, %arg5: memref<8x32xbf16, #tpu.memory_space<vmem>>, %arg6: memref<1x2x32x32xf32, #tpu.memory_space<vmem>>) attributes {dimension_semantics = [#tpu.dimension_semantics<parallel>, #tpu.dimension_semantics<parallel>], iteration_bounds = array<i64: 2, 1>, scalar_prefetch = 0 : i64, scratch_operands = 0 : i64, tpu.core_type = #tpu.core_type<tc>, window_params = [{transform_indices = @transform_0, window_bounds = array<i64: 14>}, {transform_indices = @transform_1, window_bounds = array<i64: 1, 8, 8>}, {transform_indices = @transform_2, window_bounds = array<i64: 32, 8>}, {pipeline_mode = #tpu.pipeline_mode<synchronous>, transform_indices = @transform_3, window_bounds = array<i64: 8, 32>}, {transform_indices = @transform_4, window_bounds = array<i64: 1, 2, 32, 32>}]} {
    %c0 = arith.constant 0 : index
    %c0_0 = arith.constant 0 : index
    %c0_1 = arith.constant 0 : index
    %0 = vector.load %arg3[%c0, %c0_0, %c0_1] : memref<1x8x8xf32, #tpu.memory_space<vmem>>, vector<1x8x8xf32>
    %1 = vector.shape_cast %0 : vector<1x8x8xf32> to vector<8x8xf32>
    %2 = tpu.iota {dimensions = array<i32: 0>} : vector<8x8xi32>
    %3 = tpu.iota {dimensions = array<i32: 1>} : vector<8x8xi32>
    %c1_i32 = arith.constant 1 : i32
    %4 = vector.broadcast %c1_i32 : i32 to vector<8x8xi32>
    %5 = arith.cmpi sge, %2, %4 : vector<8x8xi32>
    %c7_i32 = arith.constant 7 : i32
    %6 = vector.broadcast %c7_i32 : i32 to vector<8x8xi32>
    %7 = arith.cmpi slt, %2, %6 : vector<8x8xi32>
    %c1_i32_2 = arith.constant 1 : i32
    %8 = vector.broadcast %c1_i32_2 : i32 to vector<8x8xi32>
    %9 = arith.cmpi sge, %3, %8 : vector<8x8xi32>
    %c7_i32_3 = arith.constant 7 : i32
    %10 = vector.broadcast %c7_i32_3 : i32 to vector<8x8xi32>
    %11 = arith.cmpi slt, %3, %10 : vector<8x8xi32>
    %cst = arith.constant 0.000000e+00 : f32
    %12 = vector.broadcast %cst : f32 to vector<8x8xf32>
    %c0_4 = arith.constant 0 : index
    %13 = memref.load %arg2[%c0_4] : memref<14xf32, #tpu.memory_space<smem>>
    %c1_i32_5 = arith.constant 1 : i32
    %14 = tpu.dynamic_rotate %1 by %c1_i32_5 dim 0 : vector<8x8xf32>, i32 -> vector<8x8xf32>
    %c1_i32_6 = arith.constant 1 : i32
    %15 = tpu.dynamic_rotate %14 by %c1_i32_6 dim 1 : vector<8x8xf32>, i32 -> vector<8x8xf32>
    %16 = arith.andi %5, %9 : vector<8x8xi1>
    %cst_7 = arith.constant 0.000000e+00 : f32
    %17 = vector.broadcast %cst_7 : f32 to vector<8x8xf32>
    %18 = arith.select %16, %15, %17 : vector<8x8xi1>, vector<8x8xf32>
    %19 = vector.broadcast %13 : f32 to vector<8x8xf32>
    %20 = arith.mulf %19, %18 : vector<8x8xf32>
    %21 = arith.addf %12, %20 : vector<8x8xf32>
    %c1 = arith.constant 1 : index
    %22 = memref.load %arg2[%c1] : memref<14xf32, #tpu.memory_space<smem>>
    %c1_i32_8 = arith.constant 1 : i32
    %23 = tpu.dynamic_rotate %1 by %c1_i32_8 dim 0 : vector<8x8xf32>, i32 -> vector<8x8xf32>
    %cst_9 = arith.constant 0.000000e+00 : f32
    %24 = vector.broadcast %cst_9 : f32 to vector<8x8xf32>
    %25 = arith.select %5, %23, %24 : vector<8x8xi1>, vector<8x8xf32>
    %26 = vector.broadcast %22 : f32 to vector<8x8xf32>
    %27 = arith.mulf %26, %25 : vector<8x8xf32>
    %28 = arith.addf %21, %27 : vector<8x8xf32>
    %c2 = arith.constant 2 : index
    %29 = memref.load %arg2[%c2] : memref<14xf32, #tpu.memory_space<smem>>
    %c1_i32_10 = arith.constant 1 : i32
    %30 = tpu.dynamic_rotate %1 by %c1_i32_10 dim 0 : vector<8x8xf32>, i32 -> vector<8x8xf32>
    %c7_i32_11 = arith.constant 7 : i32
    %31 = tpu.dynamic_rotate %30 by %c7_i32_11 dim 1 : vector<8x8xf32>, i32 -> vector<8x8xf32>
    %32 = arith.andi %5, %11 : vector<8x8xi1>
    %cst_12 = arith.constant 0.000000e+00 : f32
    %33 = vector.broadcast %cst_12 : f32 to vector<8x8xf32>
    %34 = arith.select %32, %31, %33 : vector<8x8xi1>, vector<8x8xf32>
    %35 = vector.broadcast %29 : f32 to vector<8x8xf32>
    %36 = arith.mulf %35, %34 : vector<8x8xf32>
    %37 = arith.addf %28, %36 : vector<8x8xf32>
    %c3 = arith.constant 3 : index
    %38 = memref.load %arg2[%c3] : memref<14xf32, #tpu.memory_space<smem>>
    %c1_i32_13 = arith.constant 1 : i32
    %39 = tpu.dynamic_rotate %1 by %c1_i32_13 dim 1 : vector<8x8xf32>, i32 -> vector<8x8xf32>
    %cst_14 = arith.constant 0.000000e+00 : f32
    %40 = vector.broadcast %cst_14 : f32 to vector<8x8xf32>
    %41 = arith.select %9, %39, %40 : vector<8x8xi1>, vector<8x8xf32>
    %42 = vector.broadcast %38 : f32 to vector<8x8xf32>
    %43 = arith.mulf %42, %41 : vector<8x8xf32>
    %44 = arith.addf %37, %43 : vector<8x8xf32>
    %c4 = arith.constant 4 : index
    %45 = memref.load %arg2[%c4] : memref<14xf32, #tpu.memory_space<smem>>
    %46 = vector.broadcast %45 : f32 to vector<8x8xf32>
    %47 = arith.mulf %46, %1 : vector<8x8xf32>
    %48 = arith.addf %44, %47 : vector<8x8xf32>
    %c5 = arith.constant 5 : index
    %49 = memref.load %arg2[%c5] : memref<14xf32, #tpu.memory_space<smem>>
    %c7_i32_15 = arith.constant 7 : i32
    %50 = tpu.dynamic_rotate %1 by %c7_i32_15 dim 1 : vector<8x8xf32>, i32 -> vector<8x8xf32>
    %cst_16 = arith.constant 0.000000e+00 : f32
    %51 = vector.broadcast %cst_16 : f32 to vector<8x8xf32>
    %52 = arith.select %11, %50, %51 : vector<8x8xi1>, vector<8x8xf32>
    %53 = vector.broadcast %49 : f32 to vector<8x8xf32>
    %54 = arith.mulf %53, %52 : vector<8x8xf32>
    %55 = arith.addf %48, %54 : vector<8x8xf32>
    %c6 = arith.constant 6 : index
    %56 = memref.load %arg2[%c6] : memref<14xf32, #tpu.memory_space<smem>>
    %c7_i32_17 = arith.constant 7 : i32
    %57 = tpu.dynamic_rotate %1 by %c7_i32_17 dim 0 : vector<8x8xf32>, i32 -> vector<8x8xf32>
    %c1_i32_18 = arith.constant 1 : i32
    %58 = tpu.dynamic_rotate %57 by %c1_i32_18 dim 1 : vector<8x8xf32>, i32 -> vector<8x8xf32>
    %59 = arith.andi %7, %9 : vector<8x8xi1>
    %cst_19 = arith.constant 0.000000e+00 : f32
    %60 = vector.broadcast %cst_19 : f32 to vector<8x8xf32>
    %61 = arith.select %59, %58, %60 : vector<8x8xi1>, vector<8x8xf32>
    %62 = vector.broadcast %56 : f32 to vector<8x8xf32>
    %63 = arith.mulf %62, %61 : vector<8x8xf32>
    %64 = arith.addf %55, %63 : vector<8x8xf32>
    %c7 = arith.constant 7 : index
    %65 = memref.load %arg2[%c7] : memref<14xf32, #tpu.memory_space<smem>>
    %c7_i32_20 = arith.constant 7 : i32
    %66 = tpu.dynamic_rotate %1 by %c7_i32_20 dim 0 : vector<8x8xf32>, i32 -> vector<8x8xf32>
    %cst_21 = arith.constant 0.000000e+00 : f32
    %67 = vector.broadcast %cst_21 : f32 to vector<8x8xf32>
    %68 = arith.select %7, %66, %67 : vector<8x8xi1>, vector<8x8xf32>
    %69 = vector.broadcast %65 : f32 to vector<8x8xf32>
    %70 = arith.mulf %69, %68 : vector<8x8xf32>
    %71 = arith.addf %64, %70 : vector<8x8xf32>
    %c8 = arith.constant 8 : index
    %72 = memref.load %arg2[%c8] : memref<14xf32, #tpu.memory_space<smem>>
    %c7_i32_22 = arith.constant 7 : i32
    %73 = tpu.dynamic_rotate %1 by %c7_i32_22 dim 0 : vector<8x8xf32>, i32 -> vector<8x8xf32>
    %c7_i32_23 = arith.constant 7 : i32
    %74 = tpu.dynamic_rotate %73 by %c7_i32_23 dim 1 : vector<8x8xf32>, i32 -> vector<8x8xf32>
    %75 = arith.andi %7, %11 : vector<8x8xi1>
    %cst_24 = arith.constant 0.000000e+00 : f32
    %76 = vector.broadcast %cst_24 : f32 to vector<8x8xf32>
    %77 = arith.select %75, %74, %76 : vector<8x8xi1>, vector<8x8xf32>
    %78 = vector.broadcast %72 : f32 to vector<8x8xf32>
    %79 = arith.mulf %78, %77 : vector<8x8xf32>
    %80 = arith.addf %71, %79 : vector<8x8xf32>
    %c9 = arith.constant 9 : index
    %81 = memref.load %arg2[%c9] : memref<14xf32, #tpu.memory_space<smem>>
    %82 = vector.broadcast %81 : f32 to vector<8x8xf32>
    %83 = arith.addf %80, %82 : vector<8x8xf32>
    %cst_25 = arith.constant 0.000000e+00 : f32
    %84 = vector.broadcast %cst_25 : f32 to vector<8x8xf32>
    %85 = arith.maximumf %83, %84 : vector<8x8xf32>
    %86 = arith.truncf %85 : vector<8x8xf32> to vector<8x8xbf16>
    %c0_26 = arith.constant 0 : index
    %c0_27 = arith.constant 0 : index
    %87 = vector.load %arg4[%c0_26, %c0_27] : memref<32x8xbf16, #tpu.memory_space<vmem>>, vector<32x8xbf16>
    %cst_28 = arith.constant dense<0.000000e+00> : vector<32x8xf32>
    %88 = tpu.matmul %87, %86, %cst_28 {dimension_numbers = #tpu.dot_dimension_numbers<[1], [0], [0], [1], [0, 0, 1, 1], [], []>} : vector<32x8xbf16>, vector<8x8xbf16>, vector<32x8xf32> -> vector<32x8xf32>
    %89 = arith.truncf %88 : vector<32x8xf32> to vector<32x8xbf16>
    %c0_29 = arith.constant 0 : index
    %c0_30 = arith.constant 0 : index
    %90 = vector.load %arg5[%c0_29, %c0_30] : memref<8x32xbf16, #tpu.memory_space<vmem>>, vector<8x32xbf16>
    %cst_31 = arith.constant dense<0.000000e+00> : vector<32x32xf32>
    %91 = tpu.matmul %89, %90, %cst_31 {dimension_numbers = #tpu.dot_dimension_numbers<[1], [0], [0], [1], [0, 0, 1, 1], [], []>} : vector<32x8xbf16>, vector<8x32xbf16>, vector<32x32xf32> -> vector<32x32xf32>
    %c10 = arith.constant 10 : index
    %92 = memref.load %arg2[%c10] : memref<14xf32, #tpu.memory_space<smem>>
    %93 = vector.broadcast %92 : f32 to vector<32x32xf32>
    %94 = arith.mulf %91, %93 : vector<32x32xf32>
    %c12 = arith.constant 12 : index
    %95 = memref.load %arg2[%c12] : memref<14xf32, #tpu.memory_space<smem>>
    %96 = vector.broadcast %95 : f32 to vector<32x32xf32>
    %97 = arith.addf %94, %96 : vector<32x32xf32>
    %c0_32 = arith.constant 0 : index
    %c0_33 = arith.constant 0 : index
    %c0_34 = arith.constant 0 : index
    %c0_35 = arith.constant 0 : index
    %98 = vector.load %arg6[%c0_32, %c0_33, %c0_34, %c0_35] : memref<1x2x32x32xf32, #tpu.memory_space<vmem>>, vector<1x1x32x32xf32>
    %99 = vector.shape_cast %98 : vector<1x1x32x32xf32> to vector<32x32xf32>
    %100 = vector.shape_cast %97 : vector<32x32xf32> to vector<1x1x32x32xf32>
    tpu.vector_store %arg6[%c0_32, %c0_33, %c0_34, %c0_35], %100 {strides = array<i32>} : memref<1x2x32x32xf32, #tpu.memory_space<vmem>>, vector<1x1x32x32xf32>,
    %c11 = arith.constant 11 : index
    %101 = memref.load %arg2[%c11] : memref<14xf32, #tpu.memory_space<smem>>
    %102 = vector.broadcast %101 : f32 to vector<32x32xf32>
    %103 = arith.mulf %91, %102 : vector<32x32xf32>
    %c13 = arith.constant 13 : index
    %104 = memref.load %arg2[%c13] : memref<14xf32, #tpu.memory_space<smem>>
    %105 = vector.broadcast %104 : f32 to vector<32x32xf32>
    %106 = arith.addf %103, %105 : vector<32x32xf32>
    %c0_36 = arith.constant 0 : index
    %c1_37 = arith.constant 1 : index
    %c0_38 = arith.constant 0 : index
    %c0_39 = arith.constant 0 : index
    %107 = vector.load %arg6[%c0_36, %c1_37, %c0_38, %c0_39] : memref<1x2x32x32xf32, #tpu.memory_space<vmem>>, vector<1x1x32x32xf32>
    %108 = vector.shape_cast %107 : vector<1x1x32x32xf32> to vector<32x32xf32>
    %109 = vector.shape_cast %106 : vector<32x32xf32> to vector<1x1x32x32xf32>
    tpu.vector_store %arg6[%c0_36, %c1_37, %c0_38, %c0_39], %109 {strides = array<i32>} : memref<1x2x32x32xf32, #tpu.memory_space<vmem>>, vector<1x1x32x32xf32>,
    return
  }
  func.func @transform_0(%arg0: i32, %arg1: i32) -> i32 {
    %c0_i32 = arith.constant 0 : i32
    %c0_i32_0 = arith.constant 0 : i32
    return %c0_i32 : i32
  }
  func.func @transform_1(%arg0: i32, %arg1: i32) -> (i32, i32, i32) {
    %c0_i32 = arith.constant 0 : i32
    %c0_i32_0 = arith.constant 0 : i32
    %c0_i32_1 = arith.constant 0 : i32
    return %arg0, %c0_i32, %c0_i32_0 : i32, i32, i32
  }
  func.func @transform_2(%arg0: i32, %arg1: i32) -> (i32, i32) {
    %c0_i32 = arith.constant 0 : i32
    %c0_i32_0 = arith.constant 0 : i32
    return %arg1, %c0_i32 : i32, i32
  }
  func.func @transform_3(%arg0: i32, %arg1: i32) -> (i32, i32) {
    %c0_i32 = arith.constant 0 : i32
    %c0_i32_0 = arith.constant 0 : i32
    %c0_i32_1 = arith.constant 0 : i32
    return %c0_i32, %c0_i32_0 : i32, i32
  }
  func.func @transform_4(%arg0: i32, %arg1: i32) -> (i32, i32, i32, i32) {
    %c0_i32 = arith.constant 0 : i32
    %c0_i32_0 = arith.constant 0 : i32
    %c0_i32_1 = arith.constant 0 : i32
    return %arg0, %c0_i32, %arg1, %c0_i32_0 : i32, i32, i32, i32
  }
}

</mosaic_0001>

<bundles_post_ra>
// kernel: change_detection_forward.9
= control target key start
LH: loop header
LB: loop body
LE: loop exit
PB: predicated region body
PF: predicated region fallthrough
CT: control target
= control target key end

     0   :  { %v130_v3 = vmov 0   ;;  %vm58_vm0 = vcmask 392192   ;;  %s196_s1 = inlined_call_operand.vmem [shape: bf16[48,256], index: 1, kind: input, shape index: {}]   ;;  %s197_s2 = inlined_call_operand.vmem [shape: f32[8,1], index: 2, kind: input, shape index: {}]   ;;  %s198_s0 = inlined_call_operand.vmem [shape: bf16[8,48], index: 0, kind: input, shape index: {}]   ;;  %s199_s3 = inlined_call_operand.vmem [shape: bf16[8,256], index: 3, kind: output, shape index: {}]  }
   0x1   :  { %v114_v0 = vld [vmem:[%s196_s1 + $0x20] sm:$0xf]  ;;  %v127_v1 = vld [vmem:[%s196_s1 + $0x24] sm:$0xf0]  ;;  %v126_v2 = vld [vmem:[%s196_s1 + $0x24] sm:$0xf]  ;;  %129 = vset.pattern.permute.xlu0 %v130_v3 }
   0x2   :  { %v115_v4 = vor.u32 %v127_v1, %v114_v0  ;;  %v116_v5 = vld [vmem:[%s196_s1 + $0x28] sm:$0xf0]  ;;  %v106_v6 = vld [vmem:[%s196_s1 + $0x10] sm:$0xf]  ;;  %v125_v7 = vld [vmem:[%s196_s1 + $0x14] sm:$0xf0] }
   0x3   :  { %v119_v8 = vor.u32 %v126_v2, %v116_v5  ;;  %v124_v9 = vld [vmem:[%s196_s1 + $0x14] sm:$0xf]  ;;  %v108_v10 = vld [vmem:[%s196_s1 + $0x18] sm:$0xf0]  ;;  %v107_v11 = vor.u32 %v125_v7, %v106_v6  ;;  %v98_v13 = vld [vmem:[%s196_s1] sm:$0xf] }
   0x4   :  { %67 = vmatpush.bf16.msra.mxu0 %v115_v4  ;;  %v111_v12 = vor.u32 %v124_v9, %v108_v10  ;;  %v123_v14 = vld [vmem:[%s196_s1 + $0x4] sm:$0xf0]  ;;  %v22_v15 = vld [vmem:[%s197_s2] sm:$0xff]  ;;  %v100_v17 = vld [vmem:[%s196_s1 + $0x8] sm:$0xf0] }
   0x5   :  { %80 = vmatpush.bf16.msra.mxu1 %v119_v8  ;;  %v122_v16 = vld [vmem:[%s196_s1 + $0x4] sm:$0xf]  ;;  %25 = vperm.xlu0 %129, %v22_v15   ;;  %v99_v18 = vor.u32 %v123_v14, %v98_v13  ;;  %v15_v20 = vld [vmem:[%s198_s0] sm:$0xf] }
   0x6   :  { %v103_v19 = vor.u32 %v122_v16, %v100_v17 }
   0x8   :  { %68 = vmatpush.bf16.msra.mxu0 %v107_v11 }
   0x9   :  { %81 = vmatpush.bf16.msra.mxu1 %v111_v12 }
   0xc   :  { %69 = vmatpush.bf16.msra.mxu0 %v99_v18 }
   0xd   :  { %82 = vmatpush.bf16.msra.mxu1 %v103_v19 }
   0xf   :  { %120 = vmatmul.msk.bf16.vlgmr.msra.gmra.mxu0 %vm58_vm0, %v15_v20 }
  0x10   :  { %121 = vmatmul.msk.bf16.vlgmr.msra.gmra.mxu1 %vm58_vm0, %v15_v20 }
  0x77   :  { %v26_v21 = vpop.permute.xlu0 %25 }
  0x8c   :  { %v71_v22 = vpop.f32.mrf.mxu0 }
  0x8d   :  { %v72_v23 = vadd.f32 %v71_v22, %v26_v21  ;;  %v84_v24 = vpop.f32.mrf.mxu1 }
  0x8e   :  { %v85_v25 = vadd.f32 %v84_v24, %v26_v21 }
  0x8f   :  { %v88_v26 = vmax.f32 %v72_v23, 0.0 }
  0x90   :  { %v89_v27 = vmax.f32 %v85_v25, 0.0 }
  0x92   :  { %v90_v28 = vpack.c.bf16 %v89_v27, %v88_v26 }
  0x94   :  { %91 = vst [vmem:[%s199_s3] sm:$0xff] %v90_v28  ;;  %v73_v29 = vpop.f32.mrf.mxu0 }
  0x95   :  { %v86_v30 = vpop.f32.mrf.mxu1 }

// kernel: change_detection_forward.14
= control target key start
LH: loop header
LB: loop body
LE: loop exit
PB: predicated region body
PF: predicated region fallthrough
CT: control target
= control target key end

     0   :  { %v101_v2 = vmov 0   ;;  %vm40_vm0 = vcmask 130048   ;;  %vm59_vm1 = vcmask 64512   ;;  %vm83_vm2 = vcmask 253952   ;;  %s150_s0 = inlined_call_operand.vmem [shape: bf16[16,32], index: 0, kind: input, shape index: {}]   ;;  %s151_s1 = inlined_call_operand.vmem [shape: bf16[16,32], index: 1, kind: input, shape index: {}]   ;;  %s152_s3 = inlined_call_operand.vmem [shape: f32[8,1], index: 3, kind: input, shape index: {}]   ;;  %s153_s2 = inlined_call_operand.vmem [shape: bf16[8,16], index: 2, kind: input, shape index: {}]   ;;  %s154_s4 = inlined_call_operand.vmem [shape: f32[1,8], index: 4, kind: input, shape index: {}]   ;;  %s155_s5 = inlined_call_operand.vmem [shape: f32[1,32], index: 5, kind: output, shape index: {}]  }
   0x1   :  { %v92_v0 = vld [vmem:[%s150_s0] sm:$0xff]   ;;  %100 = vset.pattern.permute.xlu0 %v101_v2 }
   0x2   :  { %v96_v1 = vld [vmem:[%s151_s1] sm:$0xff]   ;;  %v93_v3 = vunpack.c.l.bf16 %v92_v0  ;;  %v94_v4 = vunpack.c.h.bf16 %v92_v0 }
   0x3   :  { %v97_v5 = vunpack.c.l.bf16 %v96_v1  ;;  %v98_v6 = vunpack.c.h.bf16 %v96_v1  ;;  %v34_v7 = vld [vmem:[%s152_s3] sm:$0xff] }
   0x4   :  { %37 = vperm.xlu0 %100, %v34_v7   ;;  %v33_v12 = vld [vmem:[%s153_s2] sm:$0xf] }
   0x5   :  { %v29_v8 = vsub.f32 %v93_v3, %v97_v5  ;;  %v30_v9 = vsub.f32 %v94_v4, %v98_v6  ;;  %v58_v17 = vld [vmem:[%s154_s4] sm:$0x1] }
   0x7   :  { %v31_v10 = vpack.c.bf16 %v30_v9, %v29_v8 }
   0x9   :  { %v32_v11 = vand.u32 2147450879, %v31_v10 }
   0xb   :  { %51 = vmatpush.bf16.msra.mxu0 %v32_v11 }
   0xe   :  { %89 = vmatmul.msk.bf16.vlgmr.msra.gmra.mxu0 %vm40_vm0, %v33_v12 }
  0x76   :  { %v38_v13 = vpop.permute.xlu0 %37 }
  0x8b   :  { %v53_v14 = vpop.f32.mrf.mxu0 }
  0x8c   :  { %v54_v15 = vadd.f32 %v53_v14, %v38_v13 }
  0x8e   :  { %v57_v16 = vmax.f32 %v54_v15, 0.0 }
  0x90   :  { %78 = vmatpush.msra.mxu1 %v57_v16 }
  0x91   :  { %90 = vmatmul.msk.f32.vlgmr.msra.gmra.mxu1 %vm59_vm1, %v58_v17 }
  0x93   :  { %v55_v18 = vpop.f32.mrf.mxu0 }
 0x10e   :  { %v80_v19 = vpop.f32.mrf.mxu1 }
 0x10f   :  { %84 = vst.msk [vmem:[%s155_s5] sm:$0x1] %vm83_vm2, %v80_v19 }

// kernel: change_detection_forward.13
= control target key start
LH: loop header
LB: loop body
LE: loop exit
PB: predicated region body
PF: predicated region fallthrough
CT: control target
= control target key end

     0   :  { %v114_v2 = vmov 0   ;;  %vm56_vm0 = vcmask 1043456   ;;  %vm52_vm1 = vcmask 64512   ;;  %s163_s0 = inlined_call_operand.vmem [shape: bf16[8,256], index: 0, kind: input, shape index: {}, may-alias: {0,1}]   ;;  %s164_s1 = inlined_call_operand.vmem [shape: bf16[8,256], index: 1, kind: input, shape index: {}, may-alias: {0,1}]   ;;  %s165_s3 = inlined_call_operand.vmem [shape: f32[8,1], index: 3, kind: input, shape index: {}]   ;;  %s166_s2 = inlined_call_operand.vmem [shape: bf16[8,8], index: 2, kind: input, shape index: {}]   ;;  %s167_s4 = inlined_call_operand.vmem [shape: f32[1,8], index: 4, kind: input, shape index: {}]   ;;  %s168_s5 = inlined_call_operand.vmem [shape: f32[1,128], index: 5, kind: output, shape index: {}]  }
   0x1   :  { %v38_v0 = vld [vmem:[%s163_s0] sm:$0xf]  ;;  %v109_v1 = vld [vmem:[%s164_s1 + $0x4] sm:$0xf]  ;;  %113 = vset.pattern.permute.xlu0 %v114_v2 }
   0x2   :  { %v40_v3 = vunpack.c.l.bf16 %v38_v0  ;;  %v41_v4 = vunpack.c.l.bf16 %v109_v1  ;;  %v46_v5 = vld [vmem:[%s165_s3] sm:$0xff] }
   0x3   :  { %49 = vperm.xlu0 %113, %v46_v5   ;;  %v45_v10 = vld [vmem:[%s166_s2] sm:$0xf] }
   0x4   :  { %v42_v6 = vsub.f32 %v40_v3, %v41_v4  ;;  %v74_v15 = vld [vmem:[%s167_s4] sm:$0x1] }
   0x6   :  { %v43_v7 = vpack.c.bf16 %v42_v6, %v42_v6 }
   0x8   :  { %v44_v8 = vand.u32 2147450879, %v43_v7 }
   0xa   :  { %v58_v9 = vsel %vm56_vm0, %v44_v8, 0 }
   0xb   :  { %67 = vmatpush.bf16.msra.mxu0 %v58_v9 }
   0xe   :  { %110 = vmatmul.msk.bf16.vlgmr.msra.gmra.mxu0 %vm52_vm1, %v45_v10 }
  0x75   :  { %v50_v11 = vpop.permute.xlu0 %49 }
  0x8b   :  { %v69_v12 = vpop.f32.mrf.mxu0 }
  0x8c   :  { %v70_v13 = vadd.f32 %v69_v12, %v50_v11 }
  0x8e   :  { %v73_v14 = vmax.f32 %v70_v13, 0.0 }
  0x90   :  { %93 = vmatpush.msra.mxu1 %v73_v14 }
  0x91   :  { %111 = vmatmul.msk.f32.vlgmr.msra.gmra.mxu1 %vm52_vm1, %v74_v15 }
  0x93   :  { %v71_v16 = vpop.f32.mrf.mxu0 }
 0x10e   :  { %v95_v17 = vpop.f32.mrf.mxu1 }
 0x10f   :  { %98 = vst [vmem:[%s168_s5] sm:$0x1] %v95_v17 }

// kernel: change_detection_forward.10
= control target key start
LH: loop header
LB: loop body
LE: loop exit
PB: predicated region body
PF: predicated region fallthrough
CT: control target
= control target key end

     0   :  { %v97_v1 = vmov 0   ;;  %vm50_vm0 = vcmask 261120   ;;  %vm72_vm1 = vcmask 519168   ;;  %s139_s1 = inlined_call_operand.vmem [shape: bf16[32,64], index: 1, kind: input, shape index: {}]   ;;  %s140_s2 = inlined_call_operand.vmem [shape: f32[16,1], index: 2, kind: input, shape index: {}]   ;;  %s141_s0 = inlined_call_operand.vmem [shape: bf16[16,32], index: 0, kind: input, shape index: {}]   ;;  %s142_s3 = inlined_call_operand.vmem [shape: bf16[16,64], index: 3, kind: output, shape index: {}]  }
   0x1   :  { %v94_v0 = vld [vmem:[%s139_s1 + $0x8] sm:$0xff]  ;;  %96 = vset.pattern.permute.xlu0 %v97_v1  ;;  %v21_v2 = vld [vmem:[%s140_s2] sm:$0xff] }
   0x2   :  { %60 = vmatpush.bf16.msra.mxu0 %v94_v0  ;;  %v93_v3 = vld [vmem:[%s139_s1] sm:$0xff]  ;;  %25 = vperm.xlu0 %96, %v21_v2   ;;  %v22_v5 = vld [vmem:[%s140_s2 + $0x8] sm:$0xff] }
   0x3   :  { %v92_v4 = vld [vmem:[%s141_s0] sm:$0xff] }
   0x6   :  { %61 = vmatpush.bf16.msra.mxu0 %v93_v3 }
   0x9   :  { %91 = vmatmul.msk.bf16.vlgmr.msra.gmra.mxu0 %vm50_vm0, %v92_v4 }
   0xa   :  { %30 = vperm.xlu0 %96, %v22_v5  }
  0x74   :  { %v26_v6 = vpop.permute.xlu0 %25 }
  0x7c   :  { %v31_v11 = vpop.permute.xlu0 %30 }
  0x86   :  { %v63_v7 = vpop.f32.mrf.mxu0 }
  0x87   :  { %v64_v8 = vadd.f32 %v63_v7, %v26_v6 }
  0x89   :  { %v68_v9 = vmax.f32 %v64_v8, 0.0 }
  0x8b   :  { %v70_v10 = vpack.c.bf16 %v68_v9, %v68_v9 }
  0x8d   :  { %73 = vst.msk [vmem:[%s142_s3] sm:$0xf] %vm72_vm1, %v70_v10 }
  0x8e   :  { %v65_v12 = vpop.f32.mrf.mxu0 }
  0x8f   :  { %v66_v13 = vadd.f32 %v65_v12, %v31_v11 }
  0x91   :  { %v69_v14 = vmax.f32 %v66_v13, 0.0 }
  0x93   :  { %v71_v15 = vpack.c.bf16 %v69_v14, %v69_v14 }
  0x95   :  { %74 = vst.msk [vmem:[%s142_s3 + $0x4] sm:$0xf] %vm72_vm1, %v71_v15 }

// kernel: change_detection_forward.11
= control target key start
LH: loop header
LB: loop body
LE: loop exit
PB: predicated region body
PF: predicated region fallthrough
CT: control target
= control target key end

     0   :  { %v167_v1 = vmov 0   ;;  %vm85_vm0 = vcmask 523264   ;;  %vm119_vm1 = vcmask 125952   ;;  %s234_s1 = inlined_call_operand.vmem [shape: bf16[64,16], index: 1, kind: input, shape index: {}]   ;;  %s235_s2 = inlined_call_operand.vmem [shape: f32[32,1], index: 2, kind: input, shape index: {}]   ;;  %s236_s0 = inlined_call_operand.vmem [shape: bf16[32,64], index: 0, kind: input, shape index: {}]   ;;  %s237_s3 = inlined_call_operand.vmem [shape: bf16[32,16], index: 3, kind: output, shape index: {}]  }
   0x1   :  { %v159_v0 = vld [vmem:[%s234_s1 + $0x18] sm:$0xff]  ;;  %166 = vset.pattern.permute.xlu1 %v167_v1  ;;  %165 = vset.pattern.permute.xlu0 %v167_v1  ;;  %v158_v2 = vld [vmem:[%s234_s1 + $0x10] sm:$0xff]  ;;  %v27_v4 = vld [vmem:[%s235_s2] sm:$0xff] }
   0x2   :  { %96 = vmatpush.bf16.msra.mxu0 %v159_v0  ;;  %160 = vmatpush.bf16.msra.mxu1 %v159_v0  ;;  %v29_v3 = vld [vmem:[%s235_s2 + $0x10] sm:$0xff]  ;;  %v157_v5 = vld [vmem:[%s234_s1 + $0x8] sm:$0xff]  ;;  %v30_v6 = vld [vmem:[%s235_s2 + $0x18] sm:$0xff] }
   0x3   :  { %43 = vperm.xlu1 %166, %v29_v3   ;;  %33 = vperm.xlu0 %165, %v27_v4   ;;  %v28_v7 = vld [vmem:[%s235_s2 + $0x8] sm:$0xff]  ;;  %v156_v8 = vld [vmem:[%s234_s1] sm:$0xff] }
   0x4   :  { %v154_v9 = vld [vmem:[%s236_s0] sm:$0xff]  ;;  %v155_v10 = vld [vmem:[%s236_s0 + $0x8] sm:$0xff] }
   0x6   :  { %97 = vmatpush.bf16.msra.mxu0 %v158_v2  ;;  %161 = vmatpush.bf16.msra.mxu1 %v158_v2 }
   0xa   :  { %98 = vmatpush.bf16.msra.mxu0 %v157_v5  ;;  %162 = vmatpush.bf16.msra.mxu1 %v157_v5 }
   0xb   :  { %48 = vperm.xlu1 %166, %v30_v6   ;;  %38 = vperm.xlu0 %165, %v28_v7  }
   0xe   :  { %99 = vmatpush.bf16.msra.mxu0 %v156_v8  ;;  %163 = vmatpush.bf16.msra.mxu1 %v156_v8 }
  0x11   :  { %152 = vmatmul.msk.bf16.vlgmr.msra.gmra.mxu0 %vm85_vm0, %v154_v9  ;;  %153 = vmatmul.msk.bf16.vlgmr.msra.gmra.mxu1 %vm85_vm0, %v155_v10 }
  0x75   :  { %v44_v11 = vpop.permute.xlu1 %43  ;;  %v34_v12 = vpop.permute.xlu0 %33 }
  0x7d   :  { %v49_v21 = vpop.permute.xlu1 %48  ;;  %v39_v22 = vpop.permute.xlu0 %38 }
  0x8e   :  { %v101_v13 = vpop.f32.mrf.mxu0  ;;  %v106_v14 = vpop.f32.mrf.mxu1 }
  0x8f   :  { %v102_v15 = vadd.f32 %v101_v13, %v34_v12  ;;  %v107_v16 = vadd.f32 %v106_v14, %v44_v11 }
  0x91   :  { %v111_v17 = vmax.f32 %v102_v15, 0.0  ;;  %v113_v18 = vmax.f32 %v107_v16, 0.0 }
  0x93   :  { %v115_v19 = vpack.c.bf16 %v111_v17, %v111_v17  ;;  %v117_v20 = vpack.c.bf16 %v113_v18, %v113_v18 }
  0x95   :  { %120 = vst.msk [vmem:[%s237_s3] sm:$0xf] %vm119_vm1, %v115_v19 }
  0x96   :  { %122 = vst.msk [vmem:[%s237_s3 + $0x8] sm:$0xf] %vm119_vm1, %v117_v20  ;;  %v103_v23 = vpop.f32.mrf.mxu0  ;;  %v108_v24 = vpop.f32.mrf.mxu1 }
  0x97   :  { %v104_v25 = vadd.f32 %v103_v23, %v39_v22  ;;  %v109_v26 = vadd.f32 %v108_v24, %v49_v21 }
  0x99   :  { %v112_v27 = vmax.f32 %v104_v25, 0.0  ;;  %v114_v28 = vmax.f32 %v109_v26, 0.0 }
  0x9b   :  { %v116_v29 = vpack.c.bf16 %v112_v27, %v112_v27  ;;  %v118_v30 = vpack.c.bf16 %v114_v28, %v114_v28 }
  0x9d   :  { %121 = vst.msk [vmem:[%s237_s3 + $0x4] sm:$0xf] %vm119_vm1, %v116_v29 }
  0x9e   :  { %123 = vst.msk [vmem:[%s237_s3 + $0xc] sm:$0xf] %vm119_vm1, %v118_v30 }

// kernel: change_detection_forward.15
= control target key start
LH: loop header
LB: loop body
LE: loop exit
PB: predicated region body
PF: predicated region fallthrough
CT: control target
= control target key end

     0   :  { %v123_v3 = vmov 0   ;;  %vm52_vm0 = vcmask 261120   ;;  %vm71_vm1 = vcmask 64512   ;;  %vm95_vm2 = vcmask 57344   ;;  %s178_s0 = inlined_call_operand.vmem [shape: bf16[32,8], index: 0, kind: input, shape index: {}]   ;;  %s179_s1 = inlined_call_operand.vmem [shape: bf16[32,8], index: 1, kind: input, shape index: {}]   ;;  %s180_s3 = inlined_call_operand.vmem [shape: f32[8,1], index: 3, kind: input, shape index: {}]   ;;  %s181_s2 = inlined_call_operand.vmem [shape: bf16[8,32], index: 2, kind: input, shape index: {}]   ;;  %s182_s4 = inlined_call_operand.vmem [shape: f32[1,8], index: 4, kind: input, shape index: {}]   ;;  %s183_s5 = inlined_call_operand.vmem [shape: f32[1,8], index: 5, kind: output, shape index: {}]  }
   0x1   :  { %v119_v0 = vld [vmem:[%s178_s0 + $0x8] sm:$0xff]   ;;  %v104_v2 = vld [vmem:[%s178_s0] sm:$0xff]   ;;  %122 = vset.pattern.permute.xlu0 %v123_v3 }
   0x2   :  { %v120_v1 = vld [vmem:[%s179_s1 + $0x8] sm:$0xff]   ;;  %v109_v4 = vunpack.c.l.bf16 %v119_v0  ;;  %v110_v5 = vunpack.c.h.bf16 %v119_v0  ;;  %v112_v8 = vld [vmem:[%s179_s1] sm:$0xff]   ;;  %v105_v10 = vunpack.c.l.bf16 %v104_v2  ;;  %v106_v11 = vunpack.c.h.bf16 %v104_v2 }
   0x3   :  { %v117_v6 = vunpack.c.l.bf16 %v120_v1  ;;  %v118_v7 = vunpack.c.h.bf16 %v120_v1  ;;  %v46_v9 = vld [vmem:[%s180_s3] sm:$0xff]  ;;  %v113_v12 = vunpack.c.l.bf16 %v112_v8  ;;  %v114_v13 = vunpack.c.h.bf16 %v112_v8 }
   0x4   :  { %49 = vperm.xlu0 %122, %v46_v9   ;;  %v45_v22 = vld [vmem:[%s181_s2] sm:$0xf] }
   0x5   :  { %v39_v14 = vsub.f32 %v109_v4, %v117_v6  ;;  %v40_v15 = vsub.f32 %v110_v5, %v118_v7  ;;  %v37_v16 = vsub.f32 %v105_v10, %v113_v12  ;;  %v38_v17 = vsub.f32 %v106_v11, %v114_v13  ;;  %v70_v27 = vld [vmem:[%s182_s4] sm:$0x1] }
   0x7   :  { %v42_v18 = vpack.c.bf16 %v40_v15, %v39_v14  ;;  %v41_v19 = vpack.c.bf16 %v38_v17, %v37_v16 }
   0x9   :  { %v44_v20 = vand.u32 2147450879, %v42_v18  ;;  %v43_v21 = vand.u32 2147450879, %v41_v19 }
   0xb   :  { %62 = vmatpush.bf16.msra.mxu0 %v44_v20 }
   0xf   :  { %63 = vmatpush.bf16.msra.mxu0 %v43_v21 }
  0x12   :  { %101 = vmatmul.msk.bf16.vlgmr.msra.gmra.mxu0 %vm52_vm0, %v45_v22 }
  0x76   :  { %v50_v23 = vpop.permute.xlu0 %49 }
  0x8f   :  { %v65_v24 = vpop.f32.mrf.mxu0 }
  0x90   :  { %v66_v25 = vadd.f32 %v65_v24, %v50_v23 }
  0x92   :  { %v69_v26 = vmax.f32 %v66_v25, 0.0 }
  0x94   :  { %90 = vmatpush.msra.mxu1 %v69_v26 }
  0x95   :  { %102 = vmatmul.msk.f32.vlgmr.msra.gmra.mxu1 %vm71_vm1, %v70_v27 }
  0x97   :  { %v67_v28 = vpop.f32.mrf.mxu0 }
 0x112   :  { %v92_v29 = vpop.f32.mrf.mxu1 }
 0x113   :  { %96 = vst.msk [vmem:[%s183_s5] sm:$0x1] %vm95_vm2, %v92_v29 }

// kernel: change_detection_forward.12
= control target key start
LH: loop header
LB: loop body
LE: loop exit
PB: predicated region body
PF: predicated region fallthrough
CT: control target
= control target key end

     0   :  { %v304_v1 = vmov 0   ;;  %vm203_vm0 = vcmask 27648   ;;  %s417_s1 = inlined_call_operand.vmem [shape: bf16[128,4], index: 1, kind: input, shape index: {}]   ;;  %s418_s2 = inlined_call_operand.vmem [shape: f32[64,1], index: 2, kind: input, shape index: {}]   ;;  %s419_s0 = inlined_call_operand.vmem [shape: bf16[64,128], index: 0, kind: input, shape index: {}]   ;;  %s420_s3 = inlined_call_operand.vmem [shape: bf16[64,4], index: 3, kind: output, shape index: {}]  }
   0x1   :  { %v275_v0 = vld [vmem:[%s417_s1 + $0x38] sm:$0xff]  ;;  %302 = vset.pattern.permute.xlu1 %v304_v1  ;;  %301 = vset.pattern.permute.xlu0 %v304_v1  ;;  %v274_v2 = vld [vmem:[%s417_s1 + $0x30] sm:$0xff]  ;;  %v38_v4 = vld [vmem:[%s418_s2] sm:$0xff] }
   0x2   :  { %303 = vset.pattern.permute.xlu2 %v304_v1  ;;  %158 = vmatpush.bf16.msra.mxu0 %v275_v0  ;;  %v40_v3 = vld [vmem:[%s418_s2 + $0x10] sm:$0xff]  ;;  %v273_v5 = vld [vmem:[%s417_s1 + $0x28] sm:$0xff]  ;;  %v42_v6 = vld [vmem:[%s418_s2 + $0x20] sm:$0xff] }
   0x3   :  { %276 = vmatpush.bf16.msra.mxu1 %v275_v0  ;;  %277 = vmatpush.bf16.msra.mxu2 %v275_v0  ;;  %v41_v7 = vld [vmem:[%s418_s2 + $0x18] sm:$0xff]  ;;  %v39_v8 = vld [vmem:[%s418_s2 + $0x8] sm:$0xff]  ;;  %v272_v9 = vld [vmem:[%s417_s1 + $0x20] sm:$0xff] }
   0x4   :  { %278 = vmatpush.bf16.msra.mxu3 %v275_v0  ;;  %58 = vperm.xlu1 %302, %v40_v3   ;;  %v43_v10 = vld [vmem:[%s418_s2 + $0x28] sm:$0xff]  ;;  %v271_v11 = vld [vmem:[%s417_s1 + $0x18] sm:$0xff]  ;;  %v44_v13 = vld [vmem:[%s418_s2 + $0x30] sm:$0xff] }
   0x5   :  { %48 = vperm.xlu0 %301, %v38_v4   ;;  %68 = vperm.xlu2 %303, %v42_v6   ;;  %v45_v12 = vld [vmem:[%s418_s2 + $0x38] sm:$0xff]  ;;  %v270_v14 = vld [vmem:[%s417_s1 + $0x10] sm:$0xff]  ;;  %v269_v15 = vld [vmem:[%s417_s1 + $0x8] sm:$0xff] }
   0x6   :  { %159 = vmatpush.bf16.msra.mxu0 %v274_v2  ;;  %v268_v16 = vld [vmem:[%s417_s1] sm:$0xff]  ;;  %v265_v18 = vld [vmem:[%s419_s0 + $0x8] sm:$0xff]  ;;  %v266_v19 = vld [vmem:[%s419_s0 + $0x10] sm:$0xff] }
   0x7   :  { %279 = vmatpush.bf16.msra.mxu1 %v274_v2  ;;  %280 = vmatpush.bf16.msra.mxu2 %v274_v2  ;;  %v264_v17 = vld [vmem:[%s419_s0] sm:$0xff]  ;;  %v267_v20 = vld [vmem:[%s419_s0 + $0x18] sm:$0xff] }
   0x8   :  { %281 = vmatpush.bf16.msra.mxu3 %v274_v2 }
   0xa   :  { %160 = vmatpush.bf16.msra.mxu0 %v273_v5 }
   0xb   :  { %282 = vmatpush.bf16.msra.mxu1 %v273_v5  ;;  %283 = vmatpush.bf16.msra.mxu2 %v273_v5 }
   0xc   :  { %284 = vmatpush.bf16.msra.mxu3 %v273_v5  ;;  %63 = vperm.xlu1 %302, %v41_v7  }
   0xd   :  { %53 = vperm.xlu0 %301, %v39_v8   ;;  %73 = vperm.xlu2 %303, %v43_v10  }
   0xe   :  { %161 = vmatpush.bf16.msra.mxu0 %v272_v9 }
   0xf   :  { %285 = vmatpush.bf16.msra.mxu1 %v272_v9  ;;  %286 = vmatpush.bf16.msra.mxu2 %v272_v9 }
  0x10   :  { %287 = vmatpush.bf16.msra.mxu3 %v272_v9 }
  0x12   :  { %162 = vmatpush.bf16.msra.mxu0 %v271_v11 }
  0x13   :  { %288 = vmatpush.bf16.msra.mxu1 %v271_v11  ;;  %289 = vmatpush.bf16.msra.mxu2 %v271_v11 }
  0x14   :  { %290 = vmatpush.bf16.msra.mxu3 %v271_v11  ;;  %83 = vperm.xlu1 %302, %v45_v12  }
  0x15   :  { %78 = vperm.xlu0 %301, %v44_v13  }
  0x16   :  { %163 = vmatpush.bf16.msra.mxu0 %v270_v14 }
  0x17   :  { %291 = vmatpush.bf16.msra.mxu1 %v270_v14  ;;  %292 = vmatpush.bf16.msra.mxu2 %v270_v14 }
  0x18   :  { %293 = vmatpush.bf16.msra.mxu3 %v270_v14 }
  0x1a   :  { %164 = vmatpush.bf16.msra.mxu0 %v269_v15 }
  0x1b   :  { %294 = vmatpush.bf16.msra.mxu1 %v269_v15  ;;  %295 = vmatpush.bf16.msra.mxu2 %v269_v15 }
  0x1c   :  { %296 = vmatpush.bf16.msra.mxu3 %v269_v15 }
  0x1e   :  { %165 = vmatpush.bf16.msra.mxu0 %v268_v16 }
  0x1f   :  { %297 = vmatpush.bf16.msra.mxu1 %v268_v16  ;;  %298 = vmatpush.bf16.msra.mxu2 %v268_v16 }
  0x20   :  { %299 = vmatpush.bf16.msra.mxu3 %v268_v16 }
  0x21   :  { %166 = vmatmul.bf16.vlgmr.msra.gmra.mxu0 %v264_v17 }
  0x22   :  { %171 = vmatmul.bf16.vlgmr.msra.gmra.mxu1 %v265_v18  ;;  %176 = vmatmul.bf16.vlgmr.msra.gmra.mxu2 %v266_v19 }
  0x23   :  { %181 = vmatmul.bf16.vlgmr.msra.gmra.mxu3 %v267_v20 }
  0x5f   :  { %v69_v31 = vpop.permute.xlu2 %68 }
  0x67   :  { %v74_v52 = vpop.permute.xlu2 %73 }
  0x76   :  { %v59_v22 = vpop.permute.xlu1 %58 }
  0x77   :  { %v49_v21 = vpop.permute.xlu0 %48 }
  0x7e   :  { %v64_v30 = vpop.permute.xlu1 %63 }
  0x7f   :  { %v54_v23 = vpop.permute.xlu0 %53 }
  0x86   :  { %v84_v51 = vpop.permute.xlu1 %83 }
  0x87   :  { %v79_v34 = vpop.permute.xlu0 %78 }
  0x9e   :  { %v167_v24 = vpop.f32.mrf.mxu0 }
  0x9f   :  { %v172_v25 = vpop.f32.mrf.mxu1  ;;  %v168_v26 = vadd.f32 %v167_v24, %v49_v21 }
  0xa0   :  { %v173_v27 = vadd.f32 %v172_v25, %v59_v22 }
  0xa1   :  { %v187_v28 = vmax.f32 %v168_v26, 0.0 }
  0xa2   :  { %v189_v29 = vmax.f32 %v173_v27, 0.0 }
  0xa3   :  { %v195_v32 = vpack.c.bf16 %v187_v28, %v187_v28 }
  0xa4   :  { %v197_v33 = vpack.c.bf16 %v189_v29, %v189_v29 }
  0xa5   :  { %204 = vst.msk [vmem:[%s420_s3] sm:$0xf] %vm203_vm0, %v195_v32  ;;  %v177_v35 = vpop.f32.mrf.mxu2 }
  0xa6   :  { %v182_v36 = vpop.f32.mrf.mxu3  ;;  %206 = vst.msk [vmem:[%s420_s3 + $0x8] sm:$0xf] %vm203_vm0, %v197_v33  ;;  %v178_v37 = vadd.f32 %v177_v35, %v69_v31  ;;  %v169_v39 = vpop.f32.mrf.mxu0 }
  0xa7   :  { %v183_v38 = vadd.f32 %v182_v36, %v79_v34  ;;  %v174_v40 = vpop.f32.mrf.mxu1  ;;  %v170_v41 = vadd.f32 %v169_v39, %v54_v23 }
  0xa8   :  { %v175_v42 = vadd.f32 %v174_v40, %v64_v30  ;;  %v191_v43 = vmax.f32 %v178_v37, 0.0 }
  0xa9   :  { %v193_v44 = vmax.f32 %v183_v38, 0.0  ;;  %v188_v45 = vmax.f32 %v170_v41, 0.0 }
  0xaa   :  { %v190_v46 = vmax.f32 %v175_v42, 0.0  ;;  %v199_v47 = vpack.c.bf16 %v191_v43, %v191_v43 }
  0xab   :  { %v201_v48 = vpack.c.bf16 %v193_v44, %v193_v44  ;;  %v196_v49 = vpack.c.bf16 %v188_v45, %v188_v45 }
  0xac   :  { %v198_v50 = vpack.c.bf16 %v190_v46, %v190_v46  ;;  %208 = vst.msk [vmem:[%s420_s3 + $0x10] sm:$0xf] %vm203_vm0, %v199_v47 }
  0xad   :  { %210 = vst.msk [vmem:[%s420_s3 + $0x18] sm:$0xf] %vm203_vm0, %v201_v48  ;;  %v179_v53 = vpop.f32.mrf.mxu2 }
  0xae   :  { %v184_v54 = vpop.f32.mrf.mxu3  ;;  %205 = vst.msk [vmem:[%s420_s3 + $0x4] sm:$0xf] %vm203_vm0, %v196_v49  ;;  %v180_v55 = vadd.f32 %v179_v53, %v74_v52 }
  0xaf   :  { %v185_v56 = vadd.f32 %v184_v54, %v84_v51  ;;  %207 = vst.msk [vmem:[%s420_s3 + $0xc] sm:$0xf] %vm203_vm0, %v198_v50 }
  0xb0   :  { %v192_v57 = vmax.f32 %v180_v55, 0.0 }
  0xb1   :  { %v194_v58 = vmax.f32 %v185_v56, 0.0 }
  0xb2   :  { %v200_v59 = vpack.c.bf16 %v192_v57, %v192_v57 }
  0xb3   :  { %v202_v60 = vpack.c.bf16 %v194_v58, %v194_v58 }
  0xb4   :  { %209 = vst.msk [vmem:[%s420_s3 + $0x14] sm:$0xf] %vm203_vm0, %v200_v59 }
  0xb5   :  { %211 = vst.msk [vmem:[%s420_s3 + $0x1c] sm:$0xf] %vm203_vm0, %v202_v60 }

// kernel: change_detection_forward.16
= control target key start
LH: loop header
LB: loop body
LE: loop exit
PB: predicated region body
PF: predicated region fallthrough
CT: control target
= control target key end

     0   :  { %v167_v3 = vmov 0   ;;  %vm76_vm0 = vcmask 523264   ;;  %vm95_vm1 = vcmask 64512   ;;  %vm119_vm2 = vcmask 8192   ;;  %s234_s0 = inlined_call_operand.vmem [shape: bf16[64,2], index: 0, kind: input, shape index: {}]   ;;  %s235_s1 = inlined_call_operand.vmem [shape: bf16[64,2], index: 1, kind: input, shape index: {}]   ;;  %s236_s3 = inlined_call_operand.vmem [shape: f32[8,1], index: 3, kind: input, shape index: {}]   ;;  %s237_s2 = inlined_call_operand.vmem [shape: bf16[8,64], index: 2, kind: input, shape index: {}]   ;;  %s238_s4 = inlined_call_operand.vmem [shape: f32[1,8], index: 4, kind: input, shape index: {}]   ;;  %s239_s5 = inlined_call_operand.vmem [shape: f32[1,2], index: 5, kind: output, shape index: {}]  }
   0x1   :  { %v161_v0 = vld [vmem:[%s234_s0 + $0x18] sm:$0xff]   ;;  %v160_v2 = vld [vmem:[%s234_s0 + $0x10] sm:$0xff]   ;;  %166 = vset.pattern.permute.xlu0 %v167_v3  ;;  %v159_v9 = vld [vmem:[%s234_s0 + $0x8] sm:$0xff]  }
   0x2   :  { %v164_v1 = vld [vmem:[%s235_s1 + $0x18] sm:$0xff]   ;;  %v141_v4 = vunpack.c.l.bf16 %v161_v0  ;;  %v142_v5 = vunpack.c.h.bf16 %v161_v0  ;;  %v163_v8 = vld [vmem:[%s235_s1 + $0x10] sm:$0xff]   ;;  %v162_v10 = vld [vmem:[%s235_s1 + $0x8] sm:$0xff]   ;;  %v137_v11 = vunpack.c.l.bf16 %v160_v2  ;;  %v138_v12 = vunpack.c.h.bf16 %v160_v2 }
   0x3   :  { %v157_v6 = vunpack.c.l.bf16 %v164_v1  ;;  %v158_v7 = vunpack.c.h.bf16 %v164_v1  ;;  %v153_v13 = vunpack.c.l.bf16 %v163_v8  ;;  %v154_v14 = vunpack.c.h.bf16 %v163_v8  ;;  %v128_v15 = vld [vmem:[%s234_s0] sm:$0xff]  }
   0x4   :  { %v144_v16 = vld [vmem:[%s235_s1] sm:$0xff]   ;;  %v133_v19 = vunpack.c.l.bf16 %v159_v9  ;;  %v134_v20 = vunpack.c.h.bf16 %v159_v9  ;;  %v149_v24 = vunpack.c.l.bf16 %v162_v10  ;;  %v150_v25 = vunpack.c.h.bf16 %v162_v10 }
   0x5   :  { %v59_v17 = vsub.f32 %v141_v4, %v157_v6  ;;  %v60_v18 = vsub.f32 %v142_v5, %v158_v7  ;;  %v70_v21 = vld [vmem:[%s236_s3] sm:$0xff]  ;;  %v57_v22 = vsub.f32 %v137_v11, %v153_v13  ;;  %v58_v23 = vsub.f32 %v138_v12, %v154_v14 }
   0x6   :  { %73 = vperm.xlu0 %166, %v70_v21   ;;  %v129_v27 = vunpack.c.l.bf16 %v128_v15  ;;  %v130_v28 = vunpack.c.h.bf16 %v128_v15  ;;  %v145_v29 = vunpack.c.l.bf16 %v144_v16  ;;  %v55_v31 = vsub.f32 %v133_v19, %v149_v24  ;;  %v69_v42 = vld [vmem:[%s237_s2] sm:$0xf] }
   0x7   :  { %v64_v26 = vpack.c.bf16 %v60_v18, %v59_v17  ;;  %v63_v30 = vpack.c.bf16 %v58_v23, %v57_v22  ;;  %v56_v32 = vsub.f32 %v134_v20, %v150_v25  ;;  %v146_v33 = vunpack.c.h.bf16 %v144_v16  ;;  %v94_v47 = vld [vmem:[%s238_s4] sm:$0x1] }
   0x8   :  { %v53_v37 = vsub.f32 %v129_v27, %v145_v29 }
   0x9   :  { %v68_v34 = vand.u32 2147450879, %v64_v26  ;;  %v67_v35 = vand.u32 2147450879, %v63_v30  ;;  %v62_v36 = vpack.c.bf16 %v56_v32, %v55_v31  ;;  %v54_v38 = vsub.f32 %v130_v28, %v146_v33 }
   0xb   :  { %84 = vmatpush.bf16.msra.mxu0 %v68_v34  ;;  %v66_v39 = vand.u32 2147450879, %v62_v36  ;;  %v61_v40 = vpack.c.bf16 %v54_v38, %v53_v37 }
   0xd   :  { %v65_v41 = vand.u32 2147450879, %v61_v40 }
   0xf   :  { %85 = vmatpush.bf16.msra.mxu0 %v67_v35 }
  0x13   :  { %86 = vmatpush.bf16.msra.mxu0 %v66_v39 }
  0x17   :  { %87 = vmatpush.bf16.msra.mxu0 %v65_v41 }
  0x1a   :  { %125 = vmatmul.msk.bf16.vlgmr.msra.gmra.mxu0 %vm76_vm0, %v69_v42 }
  0x78   :  { %v74_v43 = vpop.permute.xlu0 %73 }
  0x97   :  { %v89_v44 = vpop.f32.mrf.mxu0 }
  0x98   :  { %v90_v45 = vadd.f32 %v89_v44, %v74_v43 }
  0x9a   :  { %v93_v46 = vmax.f32 %v90_v45, 0.0 }
  0x9c   :  { %114 = vmatpush.msra.mxu1 %v93_v46 }
  0x9d   :  { %126 = vmatmul.msk.f32.vlgmr.msra.gmra.mxu1 %vm95_vm1, %v94_v47 }
  0x9f   :  { %v91_v48 = vpop.f32.mrf.mxu0 }
 0x11a   :  { %v116_v49 = vpop.f32.mrf.mxu1 }
 0x11b   :  { %120 = vst.msk [vmem:[%s239_s5] sm:$0x1] %vm119_vm2, %v116_v49 }

// kernel: change_detection_forward.17
= control target key start
LH: loop header
LB: loop body
LE: loop exit
PB: predicated region body
PF: predicated region fallthrough
CT: control target
= control target key end

     0   :  { %9 = vsyncpa [#allocation4], 0  ;;  %s996_s0 = inlined_call_operand.vmem [shape: f32[14], index: 0, kind: input, shape index: {}]   ;;  %s997_s1 = inlined_call_operand.vmem [shape: f32[2,8,8], index: 1, kind: input, shape index: {}]   ;;  %s998_s2 = inlined_call_operand.vmem [shape: bf16[32,8], index: 2, kind: input, shape index: {}]   ;;  %s999_s3 = inlined_call_operand.vmem [shape: bf16[8,32], index: 3, kind: input, shape index: {}]   ;;  %s1000_s4 = inlined_call_operand.hbm [shape: f32[2,2,32,32], index: 4, kind: output, shape index: {}]  }
   0x1   :  { %10 = vsyncpa [#allocation3], 0 }
   0x2   :  { %12 = vsyncpa [#allocation3 + $0x1], 0  ;;  %s824_s15 = smov 0   ;;  %s826_s16 = smov 0  }
   0x3   :  { %s828_s17 = smov 0   ;;  %s830_s18 = smov 0  }
   0x4   :  { %s832_s19 = smov 0   ;;  %s834_s20 = smov 0  }
   0x5 LB: > { %s576_s21 = sadd.s32 4294967295, %s792_s20   ;;  %s577_s22 = sadd.s32 4294967294, %s792_s20   ;;  %s792_s20 = sphi %s834_s20, %s18_s20   ;;  %s788_s19 = sphi %s832_s19, %s1009_s19   ;;  %s784_s18 = sphi %s830_s18, %s1008_s18   ;;  %s780_s17 = sphi %s828_s17, %s1007_s17   ;;  %s776_s16 = sphi %s826_s16, %s1006_s16   ;;  %s772_s15 = sphi %s824_s15, %s1005_s15  }
   0x6   : > { %s30_s23 = sadd.s32 1, %s788_s19  ;;  %s133_s24 = sadd.s32 1, %s780_s17 }
   0x7   : > { %p32_p0 = scmp.ge.s32.totalorder %s30_s23, 2  ;;  %p143_p1 = scmp.ne.s32.totalorder %s780_s17, %s776_s16 }
   0x8   : > { %p144_p2 = scmp.eq.s32.totalorder %s576_s21, 1  ;;  %p149_p3 = scmp.ne.s32.totalorder %s776_s16, %s772_s15 }
   0x9   : > { %s1011_s23 = smov (%p32_p0, %s30_s23), 0  ;;  %p150_p5 = scmp.eq.s32.totalorder %s577_s22, 1 }
   0xa   : > { %p864_p4 = por %p144_p2, %p143_p1  ;;  %s128_s26 = ssub.s32 %s788_s19, %s1011_s23 }
   0xb   : > { %p578_p6 = scmp.ge.s32.totalorder %s792_s20, 1  ;;  %p131_p7 = scmp.eq.s32.totalorder %s128_s26, 0 }
   0xc   : > { %p871_p8 = por %p150_p5, %p149_p3  ;;  %p157_p9 = scmp.lt.s32.totalorder %s792_s20, 3 }
   0xd   : > { %s877_s28 = scalar_select %p131_p7, %s780_s17, %s133_s24  }
   0xe   : > { %p158_p10 = pnand %p578_p6, %p157_p9  ;;  %p639_p11 = scmp.eq.s32.totalorder %s576_s21, 0 }
   0xf   : > { %s169_s5 = sshll.u32 %s996_s0, 4  ;;  %s794_s6 = smov [#allocation2]   ;;  %s170_s5 = int_to_ptr.vmem [resolvable:$true] %s169_s5 }
  0x10   : > { %p631_p12 = pneg %p158_p10  ;;  %201 = sbr.rel (%p158_p10) target bundleno = 700 (0x2bc), region = 36 }
  0x12   : > { %p632_p13 = pnand %p639_p11, %p631_p12 }
  0x14   : > { %634 = dma.vmem_to_smem (!%p632_p13), %s170_s5, 16, %s794_s6, [#allocation4]  }
  0x15   : > { %763 = dma.done.wait (%p639_p11), [#allocation4], 16  }
  0x16   : > { %765 = vsyncadd (%p639_p11), [#allocation4], 4294967280 }
  0x17   : > { %208 = sfence }
  0x18   : > { %p233_p0 = scmp.lt.s32.totalorder %s784_s18, 1  ;;  %s795_s12 = smov 8   ;;  %vm256_vm0 = vcmask 1047616   ;;  %v246_v15 = vlaneseq  ;;  %vm370_vm9 = vcmask 1043456   ;;  %vm363_vm10 = vcmask 64512  }
  0x19   : > { %s796_s13 = smov 121   ;;  %s797_s14 = smov 127   ;;  %vm436_vm11 = vcmask 261120  }
  0x1a   : > { %s234_s7 = scalar_select %p233_p0, %s784_s18, 1  ;;  %v247_v16 = vshrl.u32 %v246_v15, 7  ;;  %v249_v17 = vand.u32 127, %v246_v15 }
  0x1b   : > { %s586_s21 = sld [smem:[#allocation2 + $0x1]] }
  0x1c   : > { %s585_s8 = sshll.u32 %s234_s7, 3  ;;  %s254_s22 = sld [smem:[#allocation2]]  ;;  %vm250_vm1 = vcmp.ge.s32.totalorder %v247_v16, 1  ;;  %vm253_vm2 = vcmp.lt.s32.totalorder %v249_v17, 7  ;;  %vm252_vm3 = vcmp.ge.s32.totalorder %v249_v17, 1  ;;  %vm251_vm6 = vcmp.lt.s32.totalorder %v247_v16, 7 }
  0x1d   : > { %s236_s11 = scalar_lea.vmem %s997_s1, %s585_s8  ;;  %s587_s24 = sld [smem:[#allocation2 + $0x2]]  ;;  %vm912_vm4 = vmand %vm250_vm1, %vm253_vm2 }
  0x1e   : > { %v887_v0 = vld [vmem:[%s236_s11] sm:$0xff]  ;;  %s588_s26 = sld [smem:[#allocation2 + $0x3]]  ;;  %vm263_vm5 = vmand %vm250_vm1, %vm252_vm3 }
  0x1f   : > { %v255_v1 = vrot.slane %v887_v0, 7  ;;  %v891_v2 = vrot.slane %v887_v0, 1  ;;  %s589_s29 = sld [smem:[#allocation2 + $0x4]]  ;;  %vm321_vm7 = vmand %vm251_vm6, %vm252_vm3 }
  0x20   : > { %s917_s30 = sld [smem:[#allocation2 + $0x5]]  ;;  %vm336_vm8 = vmand %vm251_vm6, %vm253_vm2 }
  0x21   : > { %257 = vrot.lane.b32.xlu0 %v255_v1, %s795_s12  ;;  %315 = vrot.lane.b32.xlu1 %v891_v2, %s795_s12  ;;  %v273_v19 = vsel %vm250_vm1, %v255_v1, 0.0  ;;  %v274_v20 = vstv %s586_s21  ;;  %s919_s5 = sld [smem:[#allocation2 + $0x6]]  ;;  %v331_v43 = vsel %vm251_vm6, %v891_v2, 0.0 }
  0x22   : > { %v269_v22 = vstv %s254_s22  ;;  %v275_v25 = vmul.f32 %v274_v20, %v273_v19  ;;  %s921_s6 = sld [smem:[#allocation2 + $0x7]] }
  0x23   : > { %v283_v26 = vstv %s587_s24  ;;  %s593_s7 = sld [smem:[#allocation2 + $0x8]] }
  0x24   : > { %v298_v30 = vstv %s588_s26  ;;  %s594_s8 = sld [smem:[#allocation2 + $0x9]] }
  0x25   : > { %v302_v32 = vstv %s589_s29  ;;  %s607_s22 = sld [smem:[#allocation2 + $0xa]] }
  0x26   : > { %v303_v37 = vmul.f32 %v302_v32, %v887_v0  ;;  %v310_v38 = vstv %s917_s30  ;;  %s609_s24 = sld [smem:[#allocation2 + $0xb]]  ;;  %s230_s30 = sand.u32 1, %s776_s16  }
  0x27   : > { %v327_v39 = vstv %s919_s5  ;;  %s608_s26 = sld [smem:[#allocation2 + $0xc]]  ;;  %s584_s5 = sshll.u32 %s230_s30, 6 }
  0x28   : > { %v332_v44 = vstv %s921_s6  ;;  %s610_s29 = sld [smem:[#allocation2 + $0xd]]  ;;  %s232_s6 = scalar_lea.vmem [#allocation5], %s584_s5 }
  0x29   : > { %287 = vrot.lane.b32.xlu0 %v887_v0, %s795_s12  ;;  %v333_v51 = vmul.f32 %v332_v44, %v331_v43  ;;  %v341_v53 = vstv %s593_s7  ;;  %s622_s7 = sshll.u32 %s784_s18, 6  ;;  %s473_s11 = sshll.u32 %s232_s6, 4  ;;  %s474_s11 = int_to_ptr.vmem [resolvable:$true] %s473_s11 }
  0x2a   : > { %v345_v58 = vstv %s594_s8  ;;  %s472_s10 = scalar_lea.hbm %s1000_s4, %s622_s7  ;;  %s459_s18 = scalar_lea.sflag [#allocation3], %s230_s30 }
  0x93   : > { %v258_v3 = vpop.permute.xlu0 %257  ;;  %v316_v7 = vpop.permute.xlu1 %315 }
  0x94   : > { %v259_v4 = vsel %vm256_vm0, %v258_v3, %v255_v1  ;;  %v317_v8 = vsel %vm256_vm0, %v316_v7, %v891_v2 }
  0x95   : > { %260 = vrot.lane.b32.xlu1 %v259_v4, %s795_s12 }
  0x9b   : > { %v288_v5 = vpop.permute.xlu0 %287 }
  0x9c   : > { %v289_v6 = vsel %vm256_vm0, %v288_v5, %v887_v0 }
  0x9d   : > { %290 = vrot.lane.b32.xlu2 %v289_v6, %s795_s12 }
  0xa5   : > { %318 = vrot.lane.b32.xlu2 %v317_v8, %s795_s12 }
  0xf7   : > { %v291_v9 = vpop.permute.xlu2 %290 }
  0xf8   : > { %v292_v10 = vsel %vm256_vm0, %v291_v9, %v887_v0  ;;  %v620_v0 = vld [vmem:[%s998_s2] sm:$0xff] }
  0xf9   : > { %294 = vrot.lane.b32.xlu2 %v292_v10, %s796_s13 }
  0xff   : > { %v319_v11 = vpop.permute.xlu2 %318 }
 0x100   : > { %v320_v12 = vsel %vm256_vm0, %v319_v11, %v891_v2  ;;  %v395_v2 = vld [vmem:[%s999_s3] sm:$0xf]  ;;  %v442_v11 = vstv %s609_s24 }
 0x101   : > { %337 = vrot.lane.b32.xlu2 %v320_v12, %s797_s14  ;;  %v403_v3 = vsel %vm370_vm9, %v395_v2, 0 }
 0x102   : > { %412 = vmatpush.bf16.msra.mxu1 %v403_v3  ;;  %624 = vmatpush.bf16.msra.mxu3 %v403_v3 }
 0x107   : > { %v261_v13 = vpop.permute.xlu1 %260 }
 0x108   : > { %v262_v14 = vsel %vm256_vm0, %v261_v13, %v255_v1  ;;  %v621_v1 = vld [vmem:[%s998_s2 + $0x8] sm:$0xff]  ;;  %v431_v13 = vstv %s608_s26  ;;  %s730_s26 = scalar_lea.hbm %s1000_s4, 128 }
 0x109   : > { %279 = vrot.lane.b32.xlu1 %v262_v14, %s797_s14  ;;  %265 = vrot.lane.b32.xlu0 %v262_v14, %s796_s13  ;;  %v448_v14 = vstv %s610_s29 }
 0x111   : > { %306 = vrot.lane.b32.xlu0 %v292_v10, %s797_s14  ;;  %323 = vrot.lane.b32.xlu1 %v320_v12, %s796_s13  ;;  %v425_v10 = vstv %s607_s22  ;;  %s475_s13 = sshll.u32 %s472_s10, 4  ;;  %s476_s13 = int_to_ptr.hbm [resolvable:$true] %s475_s13 }
 0x112   : > { %s724_s14 = sshra.s32 %s476_s13, 4  ;;  %s725_s14 = int_to_ptr.hbm [resolvable:$true] %s724_s14 }
 0x113   : > { %s726_s21 = scalar_lea.hbm %s725_s14, 64  ;;  %p731_p5 = scmp.lt.s32.totalorder %s725_s14, %s1000_s4 }
 0x114   : > { %p727_p1 = scmp.ne.s32.totalorder %s725_s14, %s726_s21  ;;  %p732_p6 = scmp.lt.s32.totalorder %s730_s26, %s726_s21 }
 0x116   : > { %p728_p2 = pnand %p727_p1, %p864_p4  ;;  %p733_p7 = por %p732_p6, %p731_p5 }
 0x118   : > { %p729_p3 = pneg %p728_p2 }
 0x11a   : > { %p734_p9 = pnand %p733_p7, %p729_p3 }
 0x153   : > { %v295_v21 = vpop.permute.xlu2 %294 }
 0x154   : > { %v297_v31 = vsel %vm252_vm3, %v295_v21, 0.0 }
 0x155   : > { %v299_v35 = vmul.f32 %v298_v30, %v297_v31 }
 0x15b   : > { %v338_v47 = vpop.permute.xlu2 %337 }
 0x15c   : > { %v340_v54 = vsel %vm336_vm8, %v338_v47, 0.0 }
 0x15d   : > { %v342_v56 = vmul.f32 %v341_v53, %v340_v54 }
 0x17b   : > { %v280_v23 = vpop.permute.xlu1 %279  ;;  %v266_v24 = vpop.permute.xlu0 %265 }
 0x17c   : > { %v282_v27 = vsel %vm912_vm4, %v280_v23, 0.0  ;;  %v268_v28 = vsel %vm263_vm5, %v266_v24, 0.0 }
 0x17d   : > { %v270_v29 = vmul.f32 %v269_v22, %v268_v28  ;;  %v284_v33 = vmul.f32 %v283_v26, %v282_v27 }
 0x17f   : > { %v276_v34 = vadd.f32 %v275_v25, %v270_v29 }
 0x181   : > { %v285_v36 = vadd.f32 %v284_v33, %v276_v34 }
 0x183   : > { %v307_v40 = vpop.permute.xlu0 %306  ;;  %v300_v41 = vadd.f32 %v299_v35, %v285_v36  ;;  %v324_v42 = vpop.permute.xlu1 %323 }
 0x184   : > { %v309_v45 = vsel %vm253_vm2, %v307_v40, 0.0  ;;  %v326_v46 = vsel %vm321_vm7, %v324_v42, 0.0 }
 0x185   : > { %v304_v48 = vadd.f32 %v303_v37, %v300_v41  ;;  %v311_v49 = vmul.f32 %v310_v38, %v309_v45  ;;  %v328_v50 = vmul.f32 %v327_v39, %v326_v46 }
 0x187   : > { %v312_v52 = vadd.f32 %v311_v49, %v304_v48 }
 0x189   : > { %v329_v55 = vadd.f32 %v328_v50, %v312_v52 }
 0x18b   : > { %v334_v57 = vadd.f32 %v333_v51, %v329_v55 }
 0x18d   : > { %v343_v59 = vadd.f32 %v342_v56, %v334_v57 }
 0x18f   : > { %v346_v60 = vadd.f32 %v345_v58, %v343_v59 }
 0x191   : > { %v347_v61 = vmax.f32 %v346_v60, 0.0 }
 0x193   : > { %v348_v62 = vpack.c.bf16 %v347_v61, %v347_v61 }
 0x195   : > { %v372_v63 = vsel %vm370_vm9, %v348_v62, 0 }
 0x196   : > { %381 = vmatpush.bf16.msra.mxu0 %v372_v63  ;;  %623 = vmatpush.bf16.msra.mxu2 %v372_v63 }
 0x199   : > { %603 = vmatmul.msk.bf16.vlgmr.msra.gmra.mxu0 %vm363_vm10, %v620_v0  ;;  %604 = vmatmul.msk.bf16.vlgmr.msra.gmra.mxu2 %vm363_vm10, %v621_v1 }
 0x216   : > { %v383_v4 = vpop.f32.mrf.mxu0 }
 0x21c   : > { %v388_v5 = vpop.f32.mrf.mxu2 }
 0x21e   : > { %v385_v6 = vpop.f32.mrf.mxu0 }
 0x21f   : > { %v393_v7 = vpack.c.bf16 %v385_v6, %v383_v4 }
 0x221   : > { %605 = vmatmul.msk.bf16.vlgmr.msra.gmra.mxu1 %vm363_vm10, %v393_v7 }
 0x224   : > { %v390_v8 = vpop.f32.mrf.mxu2 }
 0x225   : > { %v394_v9 = vpack.c.bf16 %v390_v8, %v388_v5 }
 0x227   : > { %606 = vmatmul.msk.bf16.vlgmr.msra.gmra.mxu3 %vm363_vm10, %v394_v9 }
 0x29e   : > { %v414_v12 = vpop.f32.mrf.mxu1 }
 0x29f   : > { %v426_v15 = vmul.f32 %v425_v10, %v414_v12  ;;  %v443_v16 = vmul.f32 %v442_v11, %v414_v12 }
 0x2a1   : > { %v432_v17 = vadd.f32 %v431_v13, %v426_v15  ;;  %v449_v18 = vadd.f32 %v448_v14, %v443_v16 }
 0x2a3   : > { %437 = vst.msk [vmem:[%s232_s6] sm:$0xff] %vm436_vm11, %v432_v17 }
 0x2a4   : > { %611 = vst.msk [vmem:[%s232_s6 + $0x20] sm:$0xff] %vm436_vm11, %v449_v18 }
 0x2a6   : > { %v416_v19 = vpop.f32.mrf.mxu1 }
 0x2a7   : > { %v427_v20 = vmul.f32 %v425_v10, %v416_v19  ;;  %v444_v21 = vmul.f32 %v442_v11, %v416_v19 }
 0x2a9   : > { %v433_v22 = vadd.f32 %v431_v13, %v427_v20  ;;  %v450_v23 = vadd.f32 %v448_v14, %v444_v21 }
 0x2aa   : > { %v419_v24 = vpop.f32.mrf.mxu3 }
 0x2ab   : > { %438 = vst.msk [vmem:[%s232_s6 + $0x8] sm:$0xff] %vm436_vm11, %v433_v22  ;;  %v428_v25 = vmul.f32 %v425_v10, %v419_v24  ;;  %v445_v26 = vmul.f32 %v442_v11, %v419_v24 }
 0x2ac   : > { %612 = vst.msk [vmem:[%s232_s6 + $0x28] sm:$0xff] %vm436_vm11, %v450_v23 }
 0x2ad   : > { %v434_v27 = vadd.f32 %v431_v13, %v428_v25  ;;  %v451_v28 = vadd.f32 %v448_v14, %v445_v26 }
 0x2af   : > { %439 = vst.msk [vmem:[%s232_s6 + $0x10] sm:$0xff] %vm436_vm11, %v434_v27 }
 0x2b0   : > { %613 = vst.msk [vmem:[%s232_s6 + $0x30] sm:$0xff] %vm436_vm11, %v451_v28 }
 0x2b2   : > { %v421_v29 = vpop.f32.mrf.mxu3 }
 0x2b3   : > { %v429_v30 = vmul.f32 %v425_v10, %v421_v29  ;;  %v446_v31 = vmul.f32 %v442_v11, %v421_v29 }
 0x2b5   : > { %v435_v32 = vadd.f32 %v431_v13, %v429_v30  ;;  %v452_v33 = vadd.f32 %v448_v14, %v446_v31 }
 0x2b7   : > { %440 = vst.msk [vmem:[%s232_s6 + $0x18] sm:$0xff] %vm436_vm11, %v435_v32 }
 0x2b8   : > { %614 = vst.msk [vmem:[%s232_s6 + $0x38] sm:$0xff] %vm436_vm11, %v452_v33 }
 0x2b9   : > { %737 = shalt.err (!%p734_p9)
}
 0x2ba   : > { %s798_s30 = smov 128  }
 0x2bb   : > { %629 = dma.vmem_to_hbm [thread:$0]  (%p864_p4), %s474_s11, 1024, %s476_s13, %s459_s18, %s798_s30, %s798_s30, %s795_s12  }
 0x2bc PF: > { %p641_p10 = scmp.ge.s32.totalorder %s792_s20, 2  ;;  %s490_s6 = sand.u32 1, %s772_s15  }
 0x2bd   : > { %s491_s7 = scalar_lea.sflag [#allocation3], %s490_s6 }
 0x2be   : > { %p636_p11 = pnand %p641_p10, %p871_p8 }
 0x2c0   : > { %p637_p12 = pneg %p636_p11 }
 0x2c2   : > { %767 = dma.done.wait (%p637_p12), %s491_s7, 1024  }
 0x2c3   : > { %769 = vsyncadd (%p637_p12), %s491_s7, 4294966272  ;;  %s18_s20 = sadd.s32 1, %s792_s20   ;;  %s1005_s15 = smov %s776_s16 }
 0x2c4   : > { %p15_p13 = scmp.ge.s32.totalorder %s18_s20, 4   ;;  %s1006_s16 = smov %s780_s17 }
 0x2c5   : > { %s1007_s17 = smov %s877_s28  ;;  %s1008_s18 = smov %s788_s19 }
 0x2c6   : > { %s1009_s19 = smov %s1011_s23  ;;  %17 = sbr.rel (!%p15_p13) target bundleno = 5 (0x5), region = 80 }
 0x2cb   :  { %497 = vsyncpa [#allocation3], 1 }
 0x2cc   :  { %499 = vsyncpa [#allocation3 + $0x1], 1 }
 0x2cd   :  { %500 = vsyncpa [#allocation4], 1 }
 0x2ce   :  { %502 = vsyncpa [#allocation4 + $0x1], 1 }

</bundles_post_ra>
